<compile_context>
chip_gen: v5e
topology: v5e:2x2
jax: 0.10.0
libtpu: 0.0.40
codegen_flags: <defaults>
</compile_context>

<pallas_src>
import math
import jax
import jax.numpy as jnp
from jax.experimental import pallas as pl
from jax.experimental.pallas import tpu as pltpu

IN_FEATURES = 1024
OUT_FEATURES = 10
TM_MAX = 1024            # batch tile (rows): 4 MiB x buffer, fits all default VMEM budgets
SMALL_BATCH_FALLBACK = 256   # below this, pallas_call launch overhead dominates a 10-wide GEMV


def _round_up(x, m):
    return ((x + m - 1) // m) * m


def _linear_kernel(x_ref, w_ref, b_ref, o_ref):
    # x_ref: (TM, 1024)  w_ref: (1024, 10)  b_ref: (1, 10)  o_ref: (TM, 10)
    acc = jnp.dot(x_ref[...], w_ref[...], preferred_element_type=jnp.float32)
    o_ref[...] = (acc + b_ref[...]).astype(o_ref.dtype)


def linear_forward(x, w_t, b, *, force_pallas=False):
    """x: (B, 1024) f32, w_t: (1024, 10) f32, b: (1, 10) or (10,) f32 -> (B, 10) f32."""
    B, K = x.shape
    assert K == IN_FEATURES
    N = w_t.shape[1]
    b2 = b.reshape(1, N)

    # Small-batch fallback: nothing to pipeline, launch overhead dominates.
    if B < SMALL_BATCH_FALLBACK and not force_pallas:
        return x @ w_t + b2

    # Batch tile: multiple of 8 (sublane), capped for VMEM, and sized so the
    # grid has >= 2 tiles (megacore sharding on v7x) whenever B allows it.
    tm = min(TM_MAX, _round_up(pl.cdiv(B, 2), 8))
    tm = max(tm, 8)
    grid = (pl.cdiv(B, tm),)

    return pl.pallas_call(
        _linear_kernel,
        out_shape=jax.ShapeDtypeStruct((B, N), x.dtype),
        grid=grid,
        in_specs=[
            pl.BlockSpec((tm, K), lambda i: (i, 0)),   # x tile marches over batch
            pl.BlockSpec((K, N), lambda i: (0, 0)),    # weight resident in VMEM
            pl.BlockSpec((1, N), lambda i: (0, 0)),    # bias resident in VMEM
        ],
        out_specs=pl.BlockSpec((tm, N), lambda i: (i, 0)),  # true-width output, no padding
        compiler_params=pltpu.CompilerParams(
            dimension_semantics=("parallel",),
        ),
        cost_estimate=pl.CostEstimate(
            flops=2 * B * K * N,
            transcendentals=0,
            bytes_accessed=4 * (B * K + K * N + N + B * N),
        ),
    )(x, w_t, b2)


def init_params(key):
    """Deterministic init mimicking nn.Linear defaults (uniform +/- 1/sqrt(fan_in))."""
    kw, kb = jax.random.split(key)
    bound = 1.0 / math.sqrt(IN_FEATURES)
    # PyTorch stores weight as (out, in); we keep the transposed (in, out) layout.
    w_t = jax.random.uniform(
        kw, (IN_FEATURES, OUT_FEATURES), jnp.float32, minval=-bound, maxval=bound
    )
    b = jax.random.uniform(
        kb, (1, OUT_FEATURES), jnp.float32, minval=-bound, maxval=bound
    )
    return w_t, b


if __name__ == "__main__":
    key = jax.random.PRNGKey(0)
    k_x1, k_x2, k_p = jax.random.split(key, 3)
    w_t, b = init_params(k_p)

    # Small batch (typical readout usage) -> plain-JAX fallback path.
    x_small = jax.random.normal(k_x1, (8, IN_FEATURES), dtype=jnp.float32)
    out_small = linear_forward(x_small, w_t, b)

    # Pallas path with a non-tile-aligned batch to exercise partial-tile masking.
    B = 520
    x = jax.random.normal(k_x2, (B, IN_FEATURES), dtype=jnp.float32)
    out = linear_forward(x, w_t, b)

    jax.block_until_ready((out_small, out))

    ref_small = x_small @ w_t + b.reshape(1, -1)
    ref = x @ w_t + b.reshape(1, -1)
    assert out_small.shape == (8, OUT_FEATURES)
    assert out.shape == (B, OUT_FEATURES)
    assert jnp.allclose(out_small, ref_small, atol=1e-4, rtol=1e-4)
    assert jnp.allclose(out, ref, atol=1e-4, rtol=1e-4)

    print("KERNEL_OK")
</pallas_src>

<mosaic_0001>
module attributes {stable_mosaic.version = 11 : i64} {
  func.func @_linear_kernel(%arg0: i32, %arg1: memref<264x1024xf32, #tpu.memory_space<vmem>>, %arg2: memref<1024x10xf32, #tpu.memory_space<vmem>>, %arg3: memref<1x10xf32, #tpu.memory_space<vmem>>, %arg4: memref<264x10xf32, #tpu.memory_space<vmem>>) attributes {dimension_semantics = [#tpu.dimension_semantics<parallel>], iteration_bounds = array<i64: 2>, scalar_prefetch = 0 : i64, scratch_operands = 0 : i64, tpu.core_type = #tpu.core_type<tc>, window_params = [{transform_indices = @transform_0, window_bounds = array<i64: 264, 1024>}, {pipeline_mode = #tpu.pipeline_mode<synchronous>, transform_indices = @transform_1, window_bounds = array<i64: 1024, 10>}, {pipeline_mode = #tpu.pipeline_mode<synchronous>, transform_indices = @transform_2, window_bounds = array<i64: 1, 10>}, {transform_indices = @transform_3, window_bounds = array<i64: 264, 10>}]} {
    %c0 = arith.constant 0 : index
    %c0_0 = arith.constant 0 : index
    %0 = vector.load %arg1[%c0, %c0_0] : memref<264x1024xf32, #tpu.memory_space<vmem>>, vector<264x1024xf32>
    %c0_1 = arith.constant 0 : index
    %c0_2 = arith.constant 0 : index
    %1 = vector.load %arg2[%c0_1, %c0_2] : memref<1024x10xf32, #tpu.memory_space<vmem>>, vector<1024x10xf32>
    %cst = arith.constant dense<0.000000e+00> : vector<264x10xf32>
    %2 = tpu.matmul %0, %1, %cst {dimension_numbers = #tpu.dot_dimension_numbers<[1], [0], [0], [1], [0, 0, 1, 1], [], []>} : vector<264x1024xf32>, vector<1024x10xf32>, vector<264x10xf32> -> vector<264x10xf32>
    %c0_3 = arith.constant 0 : index
    %c0_4 = arith.constant 0 : index
    %3 = vector.load %arg3[%c0_3, %c0_4] : memref<1x10xf32, #tpu.memory_space<vmem>>, vector<1x10xf32>
    %4 = vector.broadcast %3 : vector<1x10xf32> to vector<264x10xf32>
    %5 = arith.addf %2, %4 : vector<264x10xf32>
    %c0_5 = arith.constant 0 : index
    %c0_6 = arith.constant 0 : index
    %6 = vector.load %arg4[%c0_5, %c0_6] : memref<264x10xf32, #tpu.memory_space<vmem>>, vector<264x10xf32>
    tpu.vector_store %arg4[%c0_5, %c0_6], %5 {strides = array<i32>} : memref<264x10xf32, #tpu.memory_space<vmem>>, vector<264x10xf32>,
    return
  }
  func.func @transform_0(%arg0: i32) -> (i32, i32) {
    %c0_i32 = arith.constant 0 : i32
    %c0_i32_0 = arith.constant 0 : i32
    return %arg0, %c0_i32 : i32, i32
  }
  func.func @transform_1(%arg0: i32) -> (i32, i32) {
    %c0_i32 = arith.constant 0 : i32
    %c0_i32_0 = arith.constant 0 : i32
    %c0_i32_1 = arith.constant 0 : i32
    return %c0_i32, %c0_i32_0 : i32, i32
  }
  func.func @transform_2(%arg0: i32) -> (i32, i32) {
    %c0_i32 = arith.constant 0 : i32
    %c0_i32_0 = arith.constant 0 : i32
    %c0_i32_1 = arith.constant 0 : i32
    return %c0_i32, %c0_i32_0 : i32, i32
  }
  func.func @transform_3(%arg0: i32) -> (i32, i32) {
    %c0_i32 = arith.constant 0 : i32
    %c0_i32_0 = arith.constant 0 : i32
    return %arg0, %c0_i32 : i32, i32
  }
}

</mosaic_0001>

<bundles_post_ra>
// kernel: tpu_custom_call.1
= control target key start
LH: loop header
LB: loop body
LE: loop exit
PB: predicated region body
PF: predicated region fallthrough
CT: control target
= control target key end

     0   :  { %8 = vsyncpa [#allocation3], 0  ;;  %s3408_s0 = inlined_call_operand.hbm [shape: f32[520,1024], index: 0, kind: input, shape index: {}]   ;;  %s3409_s1 = inlined_call_operand.vmem [shape: f32[1024,10], index: 1, kind: input, shape index: {}]   ;;  %s3410_s2 = inlined_call_operand.hbm [shape: f32[1,10], index: 2, kind: input, shape index: {}]   ;;  %s3411_s3 = inlined_call_operand.vmem [shape: f32[520,10], index: 3, kind: output, shape index: {}]  }
   0x1   :  { %10 = vsyncpa [#allocation3 + $0x1], 0 }
   0x2   :  { %11 = vsyncpa [#allocation5], 0  ;;  %s2288_s12 = smov 0   ;;  %s2290_s13 = smov 0  }
   0x3   :  { %s2292_s14 = smov 0   ;;  %s2294_s15 = smov 0  }
   0x4 LB: > { %s2307_s16 = sadd.s32 4294967295, %s2230_s15   ;;  %s2310_s17 = sadd.s32 1, %s2230_s15   ;;  %s2230_s15 = sphi %s2294_s15, %s3428_s15   ;;  %s2226_s14 = sphi %s2292_s14, %s3427_s14   ;;  %s2222_s13 = sphi %s2290_s13, %s3426_s13   ;;  %s2218_s12 = sphi %s2288_s12, %s3425_s12  }
   0x5   : > { %s21_s18 = ssub.s32 %s2230_s15, %s2310_s17  ;;  %s24_s19 = sadd.s32 1, %s2226_s14 }
   0x6   : > { %p22_p0 = scmp.eq.s32.totalorder %s21_s18, 0  ;;  %p31_p1 = scmp.ne.s32.totalorder %s2226_s14, %s2222_s13 }
   0x7   : > { %p32_p2 = scmp.eq.s32.totalorder %s2230_s15, 0  ;;  %p37_p3 = scmp.ne.s32.totalorder %s2222_s13, %s2218_s12 }
   0x8   : > { %s2320_s20 = scalar_select %p22_p0, %s2226_s14, %s24_s19  }
   0x9   : > { %p2322_p4 = por %p32_p2, %p31_p1  ;;  %p3412_p5 = scmp.eq.s32.totalorder %s2307_s16, 0 }
   0xa   : > { %p103_p6 = scmp.eq.s32.totalorder %s2307_s16, 1  ;;  %p1942_p7 = scmp.ge.s32.totalorder %s2230_s15, 1 }
   0xb   : > { %p2331_p8 = por %p3412_p5, %p37_p3  ;;  %p116_p9 = scmp.lt.s32.totalorder %s2230_s15, 3 }
   0xc   : > { %p2336_p10 = por %p103_p6, %p31_p1  ;;  %s131_s27 = sshll.u32 %s3410_s2, 4  ;;  %s132_s27 = int_to_ptr.hbm [resolvable:$true] %s131_s27 }
   0xd   : > { %p2340_p11 = pnand %p1942_p7, %p116_p9  ;;  %s2264_s28 = smov [#allocation4]  }
   0xe   : > { %s133_s29 = sshll.u32 %s2264_s28, 4  ;;  %p1944_p0 = scmp.ge.s32.totalorder %s2230_s15, 2  ;;  %s134_s29 = int_to_ptr.vmem [resolvable:$true] %s133_s29 }
   0xf   : > { %p1984_p12 = pneg %p2340_p11 }
  0x10   : > { %140 = sbr.rel (%p1944_p0) target bundleno = 59 (0x3b), region = 24 }
  0x11   : > { %p1985_p13 = pnand %p1984_p12, %p3412_p5 }
  0x13   : > { %1987 = dma.hbm_to_vmem [thread:$0]  (!%p1985_p13), %s132_s27, 16, %s134_s29, [#allocation5]  }
  0x15   : > { %143 = sbr.rel (!%p2322_p4) target bundleno = 59 (0x3b), region = 28  ;;  %s144_s30 = sand.u32 (%p2322_p4), 1, %s2226_s14  }
  0x16   : > { %s149_s4 = smul.u32 (%p2322_p4), 33, %s2230_s15  ;;  %s2359_s10 = scalar_lea.sflag (%p2322_p4), [#allocation3], %s144_s30 }
  0x17   : > { %s1976_s5 = smul.u32 (%p2322_p4), 2112, %s144_s30 }
  0x18   : > { %s150_s6 = ssub.s32 (%p2322_p4), 65, %s149_s4 }
  0x19   : > { %p151_p1 = scmp.lt.s32.totalorder (%p2322_p4), %s150_s6, 33  ;;  %s148_s11 = scalar_lea.vmem (%p2322_p4), [#allocation2], %s1976_s5 }
  0x1b   : > { %s3430_s6 = smov (!%p151_p1, %s150_s6), 33 }
  0x1c   : > { %s1969_s7 = sshll.u32 %s3430_s6, 6 }
  0x1d   : > { %s155_s8 = ssub.s32 2112, %s1969_s7 }
  0x1e   : > { %s156_s9 = sshll.u32 %s155_s8, 4 }
  0x1f   : > { %157 = vsyncadd %s2359_s10, %s156_s9  ;;  %p2362_p2 = scmp.ne.s32.totalorder %s1969_s7, 0  ;;  %s1975_s18 = smul.u32 2112, %s2230_s15 }
  0x20   : > { %s2367_s19 = sshll.u32 %s148_s11, 4  ;;  %s1951_s21 = sshll.u32 %s3430_s6, 10  ;;  %s166_s19 = int_to_ptr.vmem [resolvable:$true] %s2367_s19 }
  0x21   : > { %s161_s27 = scalar_lea.hbm %s3408_s0, %s1975_s18  ;;  %s2123_s30 = sshrl.u32 %s1951_s21, 4 }
  0x22   : > { %s163_s28 = sshll.u32 %s161_s27, 4  ;;  %s2132_s7 = scalar_lea.hbm %s3408_s0, 4160  ;;  %s2374_s28 = int_to_ptr.hbm [resolvable:$true] %s163_s28 }
  0x23   : > { %s2121_s29 = sshra.s32 %s2374_s28, 4  ;;  %s2122_s29 = int_to_ptr.hbm [resolvable:$true] %s2121_s29 }
  0x24   : > { %s2128_s4 = scalar_lea.hbm %s2122_s29, %s2123_s30  ;;  %p2133_p7 = scmp.lt.s32.totalorder %s2122_s29, %s3408_s0 }
  0x25   : > { %p2129_p3 = scmp.ne.s32.totalorder %s2122_s29, %s2128_s4  ;;  %p2134_p9 = scmp.lt.s32.totalorder %s2132_s7, %s2128_s4 }
  0x27   : > { %p2130_p4 = pnand %p2129_p3, %p2362_p2  ;;  %p2135_p12 = por %p2134_p9, %p2133_p7 }
  0x29   : > { %p2131_p6 = pneg %p2130_p4 }
  0x2b   : > { %p2136_p13 = pnand %p2135_p12, %p2131_p6 }
  0x2d   : > { %2139 = shalt.err (!%p2136_p13)
}
  0x2e   : > { %s2140_s11 = sshra.s32 %s166_s19, 4  ;;  %s2265_s25 = smov [#allocation2]   ;;  %s2141_s11 = int_to_ptr.vmem [resolvable:$true] %s2140_s11 }
  0x2f   : > { %s2147_s18 = scalar_lea.vmem %s2141_s11, %s2123_s30  ;;  %s2151_s26 = scalar_lea.vmem %s2265_s25, 4224 }
  0x30   : > { %p2148_p0 = scmp.ne.s32.totalorder %s2141_s11, %s2147_s18  ;;  %p2153_p4 = scmp.lt.s32.totalorder %s2151_s26, %s2147_s18 }
  0x32   : > { %p2149_p1 = pnand %p2148_p0, %p2362_p2 }
  0x34   : > { %p2150_p3 = pneg %p2149_p1 }
  0x36   : > { %p2155_p5 = pnand %p2153_p4, %p2150_p3 }
  0x38   : > { %2158 = shalt.err (!%p2155_p5)
}
  0x39   : > { %s2266_s27 = smov 1024   ;;  %s2267_s29 = smov 64  }
  0x3a   : > { %171 = dma.hbm_to_vmem [thread:$0]  (%p2362_p2), %s2374_s28, %s1951_s21, %s166_s19, %s2359_s10, %s2266_s27, %s2266_s27, %s2267_s29  }
  0x3b PF: > { %177 = sbr.rel (%p2340_p11) target bundleno = 823 (0x337), region = 32  ;;  %s2402_s30 = sand.u32 (!%p2340_p11), 1, %s2222_s13  }
  0x3c   : > { %s1977_s4 = smul.u32 (!%p2340_p11), 2112, %s2402_s30  ;;  %s180_s15 = scalar_lea.sflag (!%p2340_p11), [#allocation3], %s2402_s30 }
  0x3e   : > { %s2406_s5 = scalar_lea.vmem (!%p2340_p11), [#allocation2], %s1977_s4 }
  0x40   : > { %2209 = dma.done.wait (%p2331_p8), %s180_s15, 33792  }
  0x41   : > { %2211 = vsyncadd (%p2331_p8), %s180_s15, 4294933504  ;;  %p3418_p5 = scmp.eq.s32.totalorder %s2307_s16, 0 }
  0x43   : > { %2213 = dma.done.wait (%p3418_p5), [#allocation5], 16   ;;  %p3419_p11 = pmov %p3418_p5 }
  0x44   : > { %v501_v0 = vld [vmem:[%s3409_s1 + $0x78] sm:$0xff]  ;;  %v500_v2 = vld [vmem:[%s3409_s1 + $0x70] sm:$0xff]  ;;  %v499_v6 = vld [vmem:[%s3409_s1 + $0x68] sm:$0xff]  ;;  %s1978_s8 = smul.u32 264, %s2402_s30  ;;  %vm1546_vm0 = vcmask 80896  }
  0x45   : > { %2215 = vsyncadd (%p3419_p11), [#allocation5], 4294967280  ;;  %v533_v1 = vld [vmem:[%s3409_s1 + $0x178] sm:$0xff]  ;;  %618 = vmatpush.msra.mxu0 %v501_v0  ;;  %v532_v4 = vld [vmem:[%s3409_s1 + $0x170] sm:$0xff]  ;;  %s1972_s9 = smul.u32 (%p2336_p10), 264, %s2307_s16 }
  0x46   : > { %850 = vmatpush.msra.mxu2 %v533_v1  ;;  %v517_v3 = vld [vmem:[%s3409_s1 + $0xf8] sm:$0xff]  ;;  %v516_v7 = vld [vmem:[%s3409_s1 + $0xf0] sm:$0xff]  ;;  %v531_v8 = vld [vmem:[%s3409_s1 + $0x168] sm:$0xff]  ;;  %s3104_s30 = scalar_lea.vmem [#allocation6], %s1978_s8  }
  0x47   : > { %v549_v5 = vld [vmem:[%s3409_s1 + $0x1f8] sm:$0xff]  ;;  %734 = vmatpush.msra.mxu1 %v517_v3  ;;  %619 = vmatpush.msra.mxu0 %v500_v2  ;;  %v548_v9 = vld [vmem:[%s3409_s1 + $0x1f0] sm:$0xff]  ;;  %v515_v10 = vld [vmem:[%s3409_s1 + $0xe8] sm:$0xff]  ;;  %s3270_s26 = scalar_lea.vmem (%p2336_p10), %s3411_s3, %s1972_s9  }
  0x48   : > { %966 = vmatpush.msra.mxu3 %v549_v5  ;;  %851 = vmatpush.msra.mxu2 %v532_v4  ;;  %v498_v11 = vld [vmem:[%s3409_s1 + $0x60] sm:$0xff]  ;;  %v547_v13 = vld [vmem:[%s3409_s1 + $0x1e8] sm:$0xff]  ;;  %v497_v16 = vld [vmem:[%s3409_s1 + $0x58] sm:$0xff] }
  0x49   : > { %735 = vmatpush.msra.mxu1 %v516_v7  ;;  %v530_v12 = vld [vmem:[%s3409_s1 + $0x160] sm:$0xff]  ;;  %620 = vmatpush.msra.mxu0 %v499_v6  ;;  %v529_v17 = vld [vmem:[%s3409_s1 + $0x158] sm:$0xff]  ;;  %v496_v20 = vld [vmem:[%s3409_s1 + $0x50] sm:$0xff] }
  0x4a   : > { %967 = vmatpush.msra.mxu3 %v548_v9  ;;  %852 = vmatpush.msra.mxu2 %v531_v8  ;;  %v514_v14 = vld [vmem:[%s3409_s1 + $0xe0] sm:$0xff]  ;;  %v513_v18 = vld [vmem:[%s3409_s1 + $0xd8] sm:$0xff]  ;;  %v528_v21 = vld [vmem:[%s3409_s1 + $0x150] sm:$0xff] }
  0x4b   : > { %v546_v15 = vld [vmem:[%s3409_s1 + $0x1e0] sm:$0xff]  ;;  %736 = vmatpush.msra.mxu1 %v515_v10  ;;  %621 = vmatpush.msra.mxu0 %v498_v11  ;;  %v545_v19 = vld [vmem:[%s3409_s1 + $0x1d8] sm:$0xff]  ;;  %v512_v22 = vld [vmem:[%s3409_s1 + $0xd0] sm:$0xff] }
  0x4c   : > { %968 = vmatpush.msra.mxu3 %v547_v13  ;;  %853 = vmatpush.msra.mxu2 %v530_v12  ;;  %v544_v23 = vld [vmem:[%s3409_s1 + $0x1d0] sm:$0xff]  ;;  %v495_v24 = vld [vmem:[%s3409_s1 + $0x48] sm:$0xff]  ;;  %v494_v28 = vld [vmem:[%s3409_s1 + $0x40] sm:$0xff] }
  0x4d   : > { %737 = vmatpush.msra.mxu1 %v514_v14  ;;  %622 = vmatpush.msra.mxu0 %v497_v16  ;;  %v527_v25 = vld [vmem:[%s3409_s1 + $0x148] sm:$0xff]  ;;  %v526_v29 = vld [vmem:[%s3409_s1 + $0x140] sm:$0xff]  ;;  %v493_v32 = vld [vmem:[%s3409_s1 + $0x38] sm:$0xff] }
  0x4e   : > { %969 = vmatpush.msra.mxu3 %v546_v15  ;;  %854 = vmatpush.msra.mxu2 %v529_v17  ;;  %v511_v26 = vld [vmem:[%s3409_s1 + $0xc8] sm:$0xff]  ;;  %v510_v30 = vld [vmem:[%s3409_s1 + $0xc0] sm:$0xff]  ;;  %v525_v33 = vld [vmem:[%s3409_s1 + $0x138] sm:$0xff] }
  0x4f   : > { %738 = vmatpush.msra.mxu1 %v513_v18  ;;  %623 = vmatpush.msra.mxu0 %v496_v20  ;;  %v543_v27 = vld [vmem:[%s3409_s1 + $0x1c8] sm:$0xff]  ;;  %v542_v31 = vld [vmem:[%s3409_s1 + $0x1c0] sm:$0xff]  ;;  %v509_v34 = vld [vmem:[%s3409_s1 + $0xb8] sm:$0xff] }
  0x50   : > { %970 = vmatpush.msra.mxu3 %v545_v19  ;;  %855 = vmatpush.msra.mxu2 %v528_v21  ;;  %v541_v35 = vld [vmem:[%s3409_s1 + $0x1b8] sm:$0xff]  ;;  %v492_v36 = vld [vmem:[%s3409_s1 + $0x30] sm:$0xff]  ;;  %v491_v40 = vld [vmem:[%s3409_s1 + $0x28] sm:$0xff] }
  0x51   : > { %739 = vmatpush.msra.mxu1 %v512_v22  ;;  %624 = vmatpush.msra.mxu0 %v495_v24  ;;  %v524_v37 = vld [vmem:[%s3409_s1 + $0x130] sm:$0xff]  ;;  %v523_v41 = vld [vmem:[%s3409_s1 + $0x128] sm:$0xff]  ;;  %v490_v44 = vld [vmem:[%s3409_s1 + $0x20] sm:$0xff] }
  0x52   : > { %971 = vmatpush.msra.mxu3 %v544_v23  ;;  %856 = vmatpush.msra.mxu2 %v527_v25  ;;  %v508_v38 = vld [vmem:[%s3409_s1 + $0xb0] sm:$0xff]  ;;  %v507_v42 = vld [vmem:[%s3409_s1 + $0xa8] sm:$0xff]  ;;  %v522_v45 = vld [vmem:[%s3409_s1 + $0x120] sm:$0xff] }
  0x53   : > { %740 = vmatpush.msra.mxu1 %v511_v26  ;;  %625 = vmatpush.msra.mxu0 %v494_v28  ;;  %v540_v39 = vld [vmem:[%s3409_s1 + $0x1b0] sm:$0xff]  ;;  %v539_v43 = vld [vmem:[%s3409_s1 + $0x1a8] sm:$0xff]  ;;  %v506_v46 = vld [vmem:[%s3409_s1 + $0xa0] sm:$0xff] }
  0x54   : > { %972 = vmatpush.msra.mxu3 %v543_v27  ;;  %857 = vmatpush.msra.mxu2 %v526_v29  ;;  %v538_v47 = vld [vmem:[%s3409_s1 + $0x1a0] sm:$0xff]  ;;  %v489_v48 = vld [vmem:[%s3409_s1 + $0x18] sm:$0xff]  ;;  %v488_v52 = vld [vmem:[%s3409_s1 + $0x10] sm:$0xff] }
  0x55   : > { %741 = vmatpush.msra.mxu1 %v510_v30  ;;  %626 = vmatpush.msra.mxu0 %v493_v32  ;;  %v521_v49 = vld [vmem:[%s3409_s1 + $0x118] sm:$0xff]  ;;  %v520_v53 = vld [vmem:[%s3409_s1 + $0x110] sm:$0xff]  ;;  %v487_v56 = vld [vmem:[%s3409_s1 + $0x8] sm:$0xff] }
  0x56   : > { %973 = vmatpush.msra.mxu3 %v542_v31  ;;  %858 = vmatpush.msra.mxu2 %v525_v33  ;;  %v505_v50 = vld [vmem:[%s3409_s1 + $0x98] sm:$0xff]  ;;  %v504_v54 = vld [vmem:[%s3409_s1 + $0x90] sm:$0xff]  ;;  %v519_v57 = vld [vmem:[%s3409_s1 + $0x108] sm:$0xff] }
  0x57   : > { %742 = vmatpush.msra.mxu1 %v509_v34  ;;  %627 = vmatpush.msra.mxu0 %v492_v36  ;;  %v537_v51 = vld [vmem:[%s3409_s1 + $0x198] sm:$0xff]  ;;  %v536_v55 = vld [vmem:[%s3409_s1 + $0x190] sm:$0xff]  ;;  %v503_v58 = vld [vmem:[%s3409_s1 + $0x88] sm:$0xff] }
  0x58   : > { %974 = vmatpush.msra.mxu3 %v541_v35  ;;  %859 = vmatpush.msra.mxu2 %v524_v37  ;;  %v535_v59 = vld [vmem:[%s3409_s1 + $0x188] sm:$0xff]  ;;  %v486_v60 = vld [vmem:[%s3409_s1] sm:$0xff]  ;;  %v224_v63 = vld [vmem:[%s2406_s5 + $0x10] sm:$0xff] }
  0x59   : > { %743 = vmatpush.msra.mxu1 %v508_v38  ;;  %628 = vmatpush.msra.mxu0 %v491_v40  ;;  %v518_v61 = vld [vmem:[%s3409_s1 + $0x100] sm:$0xff]  ;;  %v597_v0 = vld [vmem:[%s3409_s1 + $0x378] sm:$0xff]  ;;  %v223_v3 = vld [vmem:[%s2406_s5 + $0x8] sm:$0xff] }
  0x5a   : > { %975 = vmatpush.msra.mxu3 %v540_v39  ;;  %860 = vmatpush.msra.mxu2 %v523_v41  ;;  %v222_v62 = vld [vmem:[%s2406_s5] sm:$0xff]  ;;  %v225_v4 = vld [vmem:[%s2406_s5 + $0x18] sm:$0xff]  ;;  %v596_v8 = vld [vmem:[%s3409_s1 + $0x370] sm:$0xff] }
  0x5b   : > { %744 = vmatpush.msra.mxu1 %v507_v42  ;;  %629 = vmatpush.msra.mxu0 %v490_v44  ;;  %v502_v1 = vld [vmem:[%s3409_s1 + $0x80] sm:$0xff]  ;;  %v565_v5 = vld [vmem:[%s3409_s1 + $0x278] sm:$0xff]  ;;  %v564_v9 = vld [vmem:[%s3409_s1 + $0x270] sm:$0xff] }
  0x5c   : > { %976 = vmatpush.msra.mxu3 %v539_v43  ;;  %861 = vmatpush.msra.mxu2 %v522_v45  ;;  %v534_v2 = vld [vmem:[%s3409_s1 + $0x180] sm:$0xff]  ;;  %v613_v6 = vld [vmem:[%s3409_s1 + $0x3f8] sm:$0xff]  ;;  %v612_v10 = vld [vmem:[%s3409_s1 + $0x3f0] sm:$0xff] }
  0x5d   : > { %745 = vmatpush.msra.mxu1 %v506_v46  ;;  %630 = vmatpush.msra.mxu0 %v489_v48  ;;  %v581_v7 = vld [vmem:[%s3409_s1 + $0x2f8] sm:$0xff]  ;;  %v580_v11 = vld [vmem:[%s3409_s1 + $0x2f0] sm:$0xff]  ;;  %v595_v12 = vld [vmem:[%s3409_s1 + $0x368] sm:$0xff] }
  0x5e   : > { %977 = vmatpush.msra.mxu3 %v538_v47  ;;  %862 = vmatpush.msra.mxu2 %v521_v49  ;;  %v563_v13 = vld [vmem:[%s3409_s1 + $0x268] sm:$0xff]  ;;  %v230_v14 = vld [vmem:[%s2406_s5 + $0x40] sm:$0xff]  ;;  %v232_v15 = vld [vmem:[%s2406_s5 + $0x50] sm:$0xff] }
  0x5f   : > { %746 = vmatpush.msra.mxu1 %v505_v50  ;;  %631 = vmatpush.msra.mxu0 %v488_v52  ;;  %v611_v16 = vld [vmem:[%s3409_s1 + $0x3e8] sm:$0xff]  ;;  %v233_v19 = vld [vmem:[%s2406_s5 + $0x58] sm:$0xff]  ;;  %v238_v20 = vld [vmem:[%s2406_s5 + $0x80] sm:$0xff] }
  0x60   : > { %978 = vmatpush.msra.mxu3 %v537_v51  ;;  %863 = vmatpush.msra.mxu2 %v520_v53  ;;  %v579_v17 = vld [vmem:[%s3409_s1 + $0x2e8] sm:$0xff]  ;;  %v240_v21 = vld [vmem:[%s2406_s5 + $0x90] sm:$0xff]  ;;  %v241_v23 = vld [vmem:[%s2406_s5 + $0x98] sm:$0xff] }
  0x61   : > { %747 = vmatpush.msra.mxu1 %v504_v54  ;;  %632 = vmatpush.msra.mxu0 %v487_v56  ;;  %v231_v18 = vld [vmem:[%s2406_s5 + $0x48] sm:$0xff]  ;;  %v594_v24 = vld [vmem:[%s3409_s1 + $0x360] sm:$0xff]  ;;  %v248_v29 = vld [vmem:[%s2406_s5 + $0xd0] sm:$0xff] }
  0x62   : > { %979 = vmatpush.msra.mxu3 %v536_v55  ;;  %864 = vmatpush.msra.mxu2 %v519_v57  ;;  %v239_v22 = vld [vmem:[%s2406_s5 + $0x88] sm:$0xff]  ;;  %v562_v25 = vld [vmem:[%s3409_s1 + $0x260] sm:$0xff]  ;;  %v249_v31 = vld [vmem:[%s2406_s5 + $0xd8] sm:$0xff] }
  0x63   : > { %748 = vmatpush.msra.mxu1 %v503_v58  ;;  %633 = vmatpush.msra.mxu0 %v486_v60  ;;  %v610_v26 = vld [vmem:[%s3409_s1 + $0x3e0] sm:$0xff]  ;;  %v247_v30 = vld [vmem:[%s2406_s5 + $0xc8] sm:$0xff]  ;;  %v256_v33 = vld [vmem:[%s2406_s5 + $0x110] sm:$0xff] }
  0x64   : > { %980 = vmatpush.msra.mxu3 %v535_v59  ;;  %865 = vmatpush.msra.mxu2 %v518_v61  ;;  %v578_v27 = vld [vmem:[%s3409_s1 + $0x2e0] sm:$0xff]  ;;  %v255_v34 = vld [vmem:[%s2406_s5 + $0x108] sm:$0xff]  ;;  %v257_v35 = vld [vmem:[%s2406_s5 + $0x118] sm:$0xff] }
  0x65   : > { %634 = vmatmul.f32.vlgmr.msra.gmra.mxu0 %v222_v62  ;;  %866 = vmatmul.f32.vlgmr.msra.gmra.mxu2 %v224_v63  ;;  %v246_v28 = vld [vmem:[%s2406_s5 + $0xc0] sm:$0xff]  ;;  %v593_v36 = vld [vmem:[%s3409_s1 + $0x358] sm:$0xff]  ;;  %v264_v41 = vld [vmem:[%s2406_s5 + $0x150] sm:$0xff] }
  0x66   : > { %1314 = vmatpush.msrb.mxu2 %v597_v0  ;;  %749 = vmatpush.msra.mxu1 %v502_v1  ;;  %v254_v32 = vld [vmem:[%s2406_s5 + $0x100] sm:$0xff]  ;;  %v561_v37 = vld [vmem:[%s3409_s1 + $0x258] sm:$0xff]  ;;  %v263_v42 = vld [vmem:[%s2406_s5 + $0x148] sm:$0xff] }
  0x67   : > { %981 = vmatpush.msra.mxu3 %v534_v2  ;;  %750 = vmatmul.f32.vlgmr.msra.gmra.mxu1 %v223_v3  ;;  %v609_v38 = vld [vmem:[%s3409_s1 + $0x3d8] sm:$0xff]  ;;  %v262_v40 = vld [vmem:[%s2406_s5 + $0x140] sm:$0xff]  ;;  %v272_v45 = vld [vmem:[%s2406_s5 + $0x190] sm:$0xff] }
  0x68   : > { %982 = vmatmul.f32.vlgmr.msra.gmra.mxu3 %v225_v4  ;;  %1082 = vmatpush.msrb.mxu0 %v565_v5  ;;  %v577_v39 = vld [vmem:[%s3409_s1 + $0x2d8] sm:$0xff]  ;;  %v270_v44 = vld [vmem:[%s2406_s5 + $0x180] sm:$0xff]  ;;  %v271_v46 = vld [vmem:[%s2406_s5 + $0x188] sm:$0xff] }
  0x69   : > { %1430 = vmatpush.msrb.mxu3 %v613_v6  ;;  %1198 = vmatpush.msrb.mxu1 %v581_v7  ;;  %v265_v43 = vld [vmem:[%s2406_s5 + $0x158] sm:$0xff]  ;;  %v592_v48 = vld [vmem:[%s3409_s1 + $0x350] sm:$0xff]  ;;  %v278_v52 = vld [vmem:[%s2406_s5 + $0x1c0] sm:$0xff] }
  0x6a   : > { %1315 = vmatpush.msrb.mxu2 %v596_v8  ;;  %1083 = vmatpush.msrb.mxu0 %v564_v9  ;;  %v273_v47 = vld [vmem:[%s2406_s5 + $0x198] sm:$0xff]  ;;  %v560_v49 = vld [vmem:[%s3409_s1 + $0x250] sm:$0xff]  ;;  %v279_v54 = vld [vmem:[%s2406_s5 + $0x1c8] sm:$0xff] }
  0x6b   : > { %1431 = vmatpush.msrb.mxu3 %v612_v10  ;;  %1199 = vmatpush.msrb.mxu1 %v580_v11  ;;  %v608_v50 = vld [vmem:[%s3409_s1 + $0x3d0] sm:$0xff]  ;;  %v281_v55 = vld [vmem:[%s2406_s5 + $0x1d8] sm:$0xff]  ;;  %v286_v56 = vld [vmem:[%s2406_s5 + $0x200] sm:$0xff] }
  0x6c   : > { %1316 = vmatpush.msrb.mxu2 %v595_v12  ;;  %1084 = vmatpush.msrb.mxu0 %v563_v13  ;;  %v576_v51 = vld [vmem:[%s3409_s1 + $0x2d0] sm:$0xff]  ;;  %v287_v58 = vld [vmem:[%s2406_s5 + $0x208] sm:$0xff]  ;;  %v289_v59 = vld [vmem:[%s2406_s5 + $0x218] sm:$0xff] }
  0x6d   : > { %637 = vmatmul.f32.gmra.mxu0 %v230_v14  ;;  %869 = vmatmul.f32.gmra.mxu2 %v232_v15  ;;  %v280_v53 = vld [vmem:[%s2406_s5 + $0x1d0] sm:$0xff]  ;;  %v591_v60 = vld [vmem:[%s3409_s1 + $0x348] sm:$0xff]  ;;  %v294_v0 = vld [vmem:[%s2406_s5 + $0x240] sm:$0xff] }
  0x6e   : > { %1432 = vmatpush.msrb.mxu3 %v611_v16  ;;  %1200 = vmatpush.msrb.mxu1 %v579_v17  ;;  %v288_v57 = vld [vmem:[%s2406_s5 + $0x210] sm:$0xff]  ;;  %v559_v61 = vld [vmem:[%s3409_s1 + $0x248] sm:$0xff]  ;;  %v297_v3 = vld [vmem:[%s2406_s5 + $0x258] sm:$0xff] }
  0x6f   : > { %753 = vmatmul.f32.gmra.mxu1 %v231_v18  ;;  %1317 = vmatpush.msrb.mxu2 %v594_v24  ;;  %v607_v62 = vld [vmem:[%s3409_s1 + $0x3c8] sm:$0xff]  ;;  %v296_v1 = vld [vmem:[%s2406_s5 + $0x250] sm:$0xff]  ;;  %v302_v4 = vld [vmem:[%s2406_s5 + $0x280] sm:$0xff] }
  0x70   : > { %985 = vmatmul.f32.gmra.mxu3 %v233_v19  ;;  %1085 = vmatpush.msrb.mxu0 %v562_v25  ;;  %v575_v63 = vld [vmem:[%s3409_s1 + $0x2c8] sm:$0xff]  ;;  %v304_v5 = vld [vmem:[%s2406_s5 + $0x290] sm:$0xff]  ;;  %v305_v7 = vld [vmem:[%s2406_s5 + $0x298] sm:$0xff] }
  0x71   : > { %1433 = vmatpush.msrb.mxu3 %v610_v26  ;;  %1201 = vmatpush.msrb.mxu1 %v578_v27  ;;  %v295_v2 = vld [vmem:[%s2406_s5 + $0x248] sm:$0xff]  ;;  %v590_v8 = vld [vmem:[%s3409_s1 + $0x340] sm:$0xff]  ;;  %v312_v12 = vld [vmem:[%s2406_s5 + $0x2d0] sm:$0xff] }
  0x72   : > { %1318 = vmatpush.msrb.mxu2 %v593_v36  ;;  %1086 = vmatpush.msrb.mxu0 %v561_v37  ;;  %v303_v6 = vld [vmem:[%s2406_s5 + $0x288] sm:$0xff]  ;;  %v558_v9 = vld [vmem:[%s3409_s1 + $0x240] sm:$0xff]  ;;  %v313_v14 = vld [vmem:[%s2406_s5 + $0x2d8] sm:$0xff] }
  0x73   : > { %1434 = vmatpush.msrb.mxu3 %v609_v38  ;;  %1202 = vmatpush.msrb.mxu1 %v577_v39  ;;  %v606_v10 = vld [vmem:[%s3409_s1 + $0x3c0] sm:$0xff]  ;;  %v311_v13 = vld [vmem:[%s2406_s5 + $0x2c8] sm:$0xff]  ;;  %v320_v17 = vld [vmem:[%s2406_s5 + $0x310] sm:$0xff] }
  0x74   : > { %1319 = vmatpush.msrb.mxu2 %v592_v48  ;;  %1087 = vmatpush.msrb.mxu0 %v560_v49  ;;  %v310_v11 = vld [vmem:[%s2406_s5 + $0x2c0] sm:$0xff]  ;;  %v319_v18 = vld [vmem:[%s2406_s5 + $0x308] sm:$0xff]  ;;  %v321_v19 = vld [vmem:[%s2406_s5 + $0x318] sm:$0xff] }
  0x75   : > { %640 = vmatmul.f32.gmra.mxu0 %v238_v20  ;;  %872 = vmatmul.f32.gmra.mxu2 %v240_v21  ;;  %v574_v15 = vld [vmem:[%s3409_s1 + $0x2c0] sm:$0xff]  ;;  %v589_v20 = vld [vmem:[%s3409_s1 + $0x338] sm:$0xff]  ;;  %v556_v37 = vld [vmem:[%s3409_s1 + $0x230] sm:$0xff] }
  0x76   : > { %1435 = vmatpush.msrb.mxu3 %v608_v50  ;;  %1203 = vmatpush.msrb.mxu1 %v576_v51  ;;  %v318_v16 = vld [vmem:[%s2406_s5 + $0x300] sm:$0xff]  ;;  %v557_v24 = vld [vmem:[%s3409_s1 + $0x238] sm:$0xff]  ;;  %v604_v38 = vld [vmem:[%s3409_s1 + $0x3b0] sm:$0xff] }
  0x77   : > { %756 = vmatmul.f32.gmra.mxu1 %v239_v22  ;;  %1320 = vmatpush.msrb.mxu2 %v591_v60  ;;  %v326_v21 = vld [vmem:[%s2406_s5 + $0x340] sm:$0xff]  ;;  %v328_v22 = vld [vmem:[%s2406_s5 + $0x350] sm:$0xff]  ;;  %v605_v25 = vld [vmem:[%s3409_s1 + $0x3b8] sm:$0xff] }
  0x78   : > { %988 = vmatmul.f32.gmra.mxu3 %v241_v23  ;;  %1088 = vmatpush.msrb.mxu0 %v559_v61  ;;  %v327_v23 = vld [vmem:[%s2406_s5 + $0x348] sm:$0xff]  ;;  %v329_v26 = vld [vmem:[%s2406_s5 + $0x358] sm:$0xff]  ;;  %v572_v39 = vld [vmem:[%s3409_s1 + $0x2b0] sm:$0xff] }
  0x79   : > { %1436 = vmatpush.msrb.mxu3 %v607_v62  ;;  %1204 = vmatpush.msrb.mxu1 %v575_v63  ;;  %v573_v27 = vld [vmem:[%s3409_s1 + $0x2b8] sm:$0xff]  ;;  %v555_v62 = vld [vmem:[%s3409_s1 + $0x228] sm:$0xff] }
  0x7a   : > { %1321 = vmatpush.msrb.mxu2 %v590_v8  ;;  %1089 = vmatpush.msrb.mxu0 %v558_v9  ;;  %v345_v36 = vld [vmem:[%s2406_s5 + $0x3d8] sm:$0xff]  ;;  %v603_v63 = vld [vmem:[%s3409_s1 + $0x3a8] sm:$0xff] }
  0x7b   : > { %1437 = vmatpush.msrb.mxu3 %v606_v10  ;;  %1205 = vmatpush.msrb.mxu1 %v574_v15  ;;  %v353_v48 = vld [vmem:[%s2406_s5 + $0x418] sm:$0xff]  ;;  %v367_v10 = vld [vmem:[%s2406_s5 + $0x488] sm:$0xff] }
  0x7c   : > { %1322 = vmatpush.msrb.mxu2 %v589_v20  ;;  %1090 = vmatpush.msrb.mxu0 %v557_v24  ;;  %v361_v61 = vld [vmem:[%s2406_s5 + $0x458] sm:$0xff] }
  0x7d   : > { %643 = vmatmul.f32.gmra.mxu0 %v246_v28  ;;  %875 = vmatmul.f32.gmra.mxu2 %v248_v29  ;;  %v334_v28 = vld [vmem:[%s2406_s5 + $0x380] sm:$0xff]  ;;  %v336_v29 = vld [vmem:[%s2406_s5 + $0x390] sm:$0xff] }
  0x7e   : > { %1438 = vmatpush.msrb.mxu3 %v605_v25  ;;  %1206 = vmatpush.msrb.mxu1 %v573_v27  ;;  %v377_v25 = vld [vmem:[%s2406_s5 + $0x4d8] sm:$0xff]  ;;  %v602_v27 = vld [vmem:[%s3409_s1 + $0x3a0] sm:$0xff] }
  0x7f   : > { %759 = vmatmul.f32.gmra.mxu1 %v247_v30  ;;  %v335_v30 = vld [vmem:[%s2406_s5 + $0x388] sm:$0xff]  ;;  %1091 = vmatpush.msrb.mxu0 %v556_v37 }
  0x80   : > { %991 = vmatmul.f32.gmra.mxu3 %v249_v31  ;;  %v337_v31 = vld [vmem:[%s2406_s5 + $0x398] sm:$0xff]  ;;  %1207 = vmatpush.msrb.mxu1 %v572_v39 }
  0x81   : > { %1439 = vmatpush.msrb.mxu3 %v604_v38  ;;  %1092 = vmatpush.msrb.mxu0 %v555_v62  ;;  %v383_v38 = vld [vmem:[%s2406_s5 + $0x508] sm:$0xff]  ;;  %v398_v62 = vld [vmem:[%s2406_s5 + $0x580] sm:$0xff] }
  0x83   : > { %1440 = vmatpush.msrb.mxu3 %v603_v63  ;;  %v400_v63 = vld [vmem:[%s2406_s5 + $0x590] sm:$0xff] }
  0x85   : > { %646 = vmatmul.f32.gmra.mxu0 %v254_v32  ;;  %878 = vmatmul.f32.gmra.mxu2 %v256_v33  ;;  %v342_v32 = vld [vmem:[%s2406_s5 + $0x3c0] sm:$0xff]  ;;  %v344_v33 = vld [vmem:[%s2406_s5 + $0x3d0] sm:$0xff] }
  0x86   : > { %1441 = vmatpush.msrb.mxu3 %v602_v27 }
  0x87   : > { %762 = vmatmul.f32.gmra.mxu1 %v255_v34  ;;  %v343_v34 = vld [vmem:[%s2406_s5 + $0x3c8] sm:$0xff] }
  0x88   : > { %994 = vmatmul.f32.gmra.mxu3 %v257_v35  ;;  %v588_v35 = vld [vmem:[%s3409_s1 + $0x330] sm:$0xff] }
  0x89   : > { %1323 = vmatpush.msrb.mxu2 %v588_v35 }
  0x8d   : > { %649 = vmatmul.f32.gmra.mxu0 %v262_v40  ;;  %881 = vmatmul.f32.gmra.mxu2 %v264_v41  ;;  %v2792_v40 = vld [vmem:[#allocation4] ss:$0 sm:$0xff] }
  0x8f   : > { %765 = vmatmul.f32.gmra.mxu1 %v263_v42  ;;  %v350_v42 = vld [vmem:[%s2406_s5 + $0x400] sm:$0xff] }
  0x90   : > { %997 = vmatmul.f32.gmra.mxu3 %v265_v43  ;;  %v352_v43 = vld [vmem:[%s2406_s5 + $0x410] sm:$0xff] }
  0x95   : > { %652 = vmatmul.f32.gmra.mxu0 %v270_v44  ;;  %884 = vmatmul.f32.gmra.mxu2 %v272_v45 }
  0x97   : > { %768 = vmatmul.f32.gmra.mxu1 %v271_v46  ;;  %v351_v46 = vld [vmem:[%s2406_s5 + $0x408] sm:$0xff] }
  0x98   : > { %1000 = vmatmul.f32.gmra.mxu3 %v273_v47 }
  0x9d   : > { %655 = vmatmul.f32.gmra.mxu0 %v278_v52  ;;  %887 = vmatmul.f32.gmra.mxu2 %v280_v53  ;;  %v358_v52 = vld [vmem:[%s2406_s5 + $0x440] sm:$0xff]  ;;  %v360_v53 = vld [vmem:[%s2406_s5 + $0x450] sm:$0xff] }
  0x9f   : > { %771 = vmatmul.f32.gmra.mxu1 %v279_v54 }
  0xa0   : > { %1003 = vmatmul.f32.gmra.mxu3 %v281_v55 }
  0xa5   : > { %658 = vmatmul.f32.gmra.mxu0 %v286_v56  ;;  %890 = vmatmul.f32.gmra.mxu2 %v288_v57 }
  0xa7   : > { %774 = vmatmul.f32.gmra.mxu1 %v287_v58  ;;  %v359_v58 = vld [vmem:[%s2406_s5 + $0x448] sm:$0xff] }
  0xa8   : > { %1006 = vmatmul.f32.gmra.mxu3 %v289_v59  ;;  %v587_v59 = vld [vmem:[%s3409_s1 + $0x328] sm:$0xff] }
  0xa9   : > { %1324 = vmatpush.msrb.mxu2 %v587_v59  ;;  %v569_v59 = vld [vmem:[%s3409_s1 + $0x298] sm:$0xff] }
  0xad   : > { %661 = vmatmul.f32.gmra.mxu0 %v294_v0  ;;  %893 = vmatmul.f32.gmra.mxu2 %v296_v1  ;;  %v571_v0 = vld [vmem:[%s3409_s1 + $0x2a8] sm:$0xff] }
  0xae   : > { %1208 = vmatpush.msrb.mxu1 %v571_v0 }
  0xaf   : > { %777 = vmatmul.f32.gmra.mxu1 %v295_v2 }
  0xb0   : > { %1009 = vmatmul.f32.gmra.mxu3 %v297_v3 }
  0xb5   : > { %664 = vmatmul.f32.gmra.mxu0 %v302_v4  ;;  %896 = vmatmul.f32.gmra.mxu2 %v304_v5  ;;  %v366_v4 = vld [vmem:[%s2406_s5 + $0x480] sm:$0xff]  ;;  %v368_v5 = vld [vmem:[%s2406_s5 + $0x490] sm:$0xff] }
  0xb7   : > { %780 = vmatmul.f32.gmra.mxu1 %v303_v6 }
  0xb8   : > { %1012 = vmatmul.f32.gmra.mxu3 %v305_v7 }
  0xbd   : > { %667 = vmatmul.f32.gmra.mxu0 %v310_v11  ;;  %899 = vmatmul.f32.gmra.mxu2 %v312_v12  ;;  %v369_v12 = vld [vmem:[%s2406_s5 + $0x498] sm:$0xff] }
  0xbf   : > { %783 = vmatmul.f32.gmra.mxu1 %v311_v13 }
  0xc0   : > { %1015 = vmatmul.f32.gmra.mxu3 %v313_v14 }
  0xc5   : > { %670 = vmatmul.f32.gmra.mxu0 %v318_v16  ;;  %902 = vmatmul.f32.gmra.mxu2 %v320_v17  ;;  %v374_v16 = vld [vmem:[%s2406_s5 + $0x4c0] sm:$0xff]  ;;  %v376_v17 = vld [vmem:[%s2406_s5 + $0x4d0] sm:$0xff] }
  0xc7   : > { %786 = vmatmul.f32.gmra.mxu1 %v319_v18 }
  0xc8   : > { %1018 = vmatmul.f32.gmra.mxu3 %v321_v19 }
  0xcd   : > { %673 = vmatmul.f32.gmra.mxu0 %v326_v21  ;;  %905 = vmatmul.f32.gmra.mxu2 %v328_v22  ;;  %v375_v22 = vld [vmem:[%s2406_s5 + $0x4c8] sm:$0xff] }
  0xcf   : > { %789 = vmatmul.f32.gmra.mxu1 %v327_v23  ;;  %v586_v23 = vld [vmem:[%s3409_s1 + $0x320] sm:$0xff] }
  0xd0   : > { %1021 = vmatmul.f32.gmra.mxu3 %v329_v26  ;;  %v554_v26 = vld [vmem:[%s3409_s1 + $0x220] sm:$0xff]  ;;  %1325 = vmatpush.msrb.mxu2 %v586_v23  ;;  %v600_v23 = vld [vmem:[%s3409_s1 + $0x390] sm:$0xff] }
  0xd1   : > { %1093 = vmatpush.msrb.mxu0 %v554_v26  ;;  %v568_v26 = vld [vmem:[%s3409_s1 + $0x290] sm:$0xff] }
  0xd5   : > { %676 = vmatmul.f32.gmra.mxu0 %v334_v28  ;;  %908 = vmatmul.f32.gmra.mxu2 %v336_v29  ;;  %v570_v29 = vld [vmem:[%s3409_s1 + $0x2a0] sm:$0xff] }
  0xd6   : > { %1209 = vmatpush.msrb.mxu1 %v570_v29  ;;  %v416_v29 = vld [vmem:[%s2406_s5 + $0x610] sm:$0xff] }
  0xd7   : > { %792 = vmatmul.f32.gmra.mxu1 %v335_v30 }
  0xd8   : > { %1024 = vmatmul.f32.gmra.mxu3 %v337_v31  ;;  %1210 = vmatpush.msrb.mxu1 %v569_v59 }
  0xda   : > { %1211 = vmatpush.msrb.mxu1 %v568_v26  ;;  %v566_v26 = vld [vmem:[%s3409_s1 + $0x280] sm:$0xff] }
  0xdd   : > { %679 = vmatmul.f32.gmra.mxu0 %v342_v32  ;;  %911 = vmatmul.f32.gmra.mxu2 %v344_v33  ;;  %v382_v32 = vld [vmem:[%s2406_s5 + $0x500] sm:$0xff]  ;;  %v384_v33 = vld [vmem:[%s2406_s5 + $0x510] sm:$0xff] }
  0xdf   : > { %795 = vmatmul.f32.gmra.mxu1 %v343_v34 }
  0xe0   : > { %1027 = vmatmul.f32.gmra.mxu3 %v345_v36 }
  0xe2   : > { %v635_v41 = vpop.f32.mrf.mxu0 }
  0xe3   : > { %v636_v44 = vadd.f32 %v2792_v40, %v635_v41  ;;  %v385_v41 = vld [vmem:[%s2406_s5 + $0x518] sm:$0xff] }
  0xe4   : > { %v751_v45 = vpop.f32.mrf.mxu1 }
  0xe5   : > { %v752_v47 = vadd.f32 %v751_v45, %v636_v44  ;;  %682 = vmatmul.f32.gmra.mxu0 %v350_v42  ;;  %914 = vmatmul.f32.gmra.mxu2 %v352_v43  ;;  %v390_v45 = vld [vmem:[%s2406_s5 + $0x540] sm:$0xff] }
  0xe7   : > { %798 = vmatmul.f32.gmra.mxu1 %v351_v46  ;;  %v392_v46 = vld [vmem:[%s2406_s5 + $0x550] sm:$0xff] }
  0xe8   : > { %1030 = vmatmul.f32.gmra.mxu3 %v353_v48  ;;  %v867_v49 = vpop.f32.mrf.mxu2 }
  0xe9   : > { %v868_v50 = vadd.f32 %v867_v49, %v752_v47 }
  0xea   : > { %v638_v51 = vpop.f32.mrf.mxu0 }
  0xeb   : > { %v639_v54 = vadd.f32 %v2792_v40, %v638_v51  ;;  %v983_v55 = vpop.f32.mrf.mxu3  ;;  %v391_v51 = vld [vmem:[%s2406_s5 + $0x548] sm:$0xff] }
  0xec   : > { %v2802_v56 = vadd.f32 %v983_v55, %v868_v50  ;;  %v754_v57 = vpop.f32.mrf.mxu1  ;;  %v553_v55 = vld [vmem:[%s3409_s1 + $0x218] sm:$0xff] }
  0xed   : > { %v755_v60 = vadd.f32 %v754_v57, %v639_v54  ;;  %685 = vmatmul.f32.gmra.mxu0 %v358_v52  ;;  %917 = vmatmul.f32.gmra.mxu2 %v360_v53  ;;  %v585_v52 = vld [vmem:[%s3409_s1 + $0x318] sm:$0xff] }
  0xee   : > { %v393_v54 = vld [vmem:[%s2406_s5 + $0x558] sm:$0xff]  ;;  %1326 = vmatpush.msrb.mxu2 %v585_v52  ;;  %1094 = vmatpush.msrb.mxu0 %v553_v55  ;;  %v583_v52 = vld [vmem:[%s3409_s1 + $0x308] sm:$0xff] }
  0xef   : > { %801 = vmatmul.f32.gmra.mxu1 %v359_v58  ;;  %v601_v57 = vld [vmem:[%s3409_s1 + $0x398] sm:$0xff] }
  0xf0   : > { %1033 = vmatmul.f32.gmra.mxu3 %v361_v61  ;;  %v870_v1 = vpop.f32.mrf.mxu2 }
  0xf1   : > { %v871_v2 = vadd.f32 %v870_v1, %v755_v60  ;;  %1442 = vmatpush.msrb.mxu3 %v601_v57 }
  0xf2   : > { %v641_v3 = vpop.f32.mrf.mxu0 }
  0xf3   : > { %v642_v6 = vadd.f32 %v2792_v40, %v641_v3  ;;  %v986_v7 = vpop.f32.mrf.mxu3  ;;  %1443 = vmatpush.msrb.mxu3 %v600_v23  ;;  %v550_v23 = vld [vmem:[%s3409_s1 + $0x200] sm:$0xff] }
  0xf4   : > { %v2821_v8 = vadd.f32 %v986_v7, %v871_v2  ;;  %v757_v9 = vpop.f32.mrf.mxu1 }
  0xf5   : > { %v758_v11 = vadd.f32 %v757_v9, %v642_v6  ;;  %688 = vmatmul.f32.gmra.mxu0 %v366_v4  ;;  %920 = vmatmul.f32.gmra.mxu2 %v368_v5  ;;  %v399_v4 = vld [vmem:[%s2406_s5 + $0x588] sm:$0xff]  ;;  %v401_v6 = vld [vmem:[%s2406_s5 + $0x598] sm:$0xff] }
  0xf7   : > { %804 = vmatmul.f32.gmra.mxu1 %v367_v10 }
  0xf8   : > { %1036 = vmatmul.f32.gmra.mxu3 %v369_v12  ;;  %v873_v13 = vpop.f32.mrf.mxu2  ;;  %v408_v12 = vld [vmem:[%s2406_s5 + $0x5d0] sm:$0xff] }
  0xf9   : > { %v874_v14 = vadd.f32 %v873_v13, %v758_v11  ;;  %v406_v11 = vld [vmem:[%s2406_s5 + $0x5c0] sm:$0xff] }
  0xfa   : > { %v644_v15 = vpop.f32.mrf.mxu0 }
  0xfb   : > { %v645_v18 = vadd.f32 %v2792_v40, %v644_v15  ;;  %v989_v19 = vpop.f32.mrf.mxu3 }
  0xfc   : > { %v2828_v20 = vadd.f32 %v989_v19, %v874_v14  ;;  %v760_v21 = vpop.f32.mrf.mxu1  ;;  %v409_v19 = vld [vmem:[%s2406_s5 + $0x5d8] sm:$0xff] }
  0xfd   : > { %v761_v24 = vadd.f32 %v760_v21, %v645_v18  ;;  %691 = vmatmul.f32.gmra.mxu0 %v374_v16  ;;  %923 = vmatmul.f32.gmra.mxu2 %v376_v17  ;;  %v407_v17 = vld [vmem:[%s2406_s5 + $0x5c8] sm:$0xff]  ;;  %v584_v21 = vld [vmem:[%s3409_s1 + $0x310] sm:$0xff] }
  0xfe   : > { %1327 = vmatpush.msrb.mxu2 %v584_v21  ;;  %v582_v21 = vld [vmem:[%s3409_s1 + $0x300] sm:$0xff] }
  0xff   : > { %807 = vmatmul.f32.gmra.mxu1 %v375_v22  ;;  %v552_v22 = vld [vmem:[%s3409_s1 + $0x210] sm:$0xff] }
 0x100   : > { %1039 = vmatmul.f32.gmra.mxu3 %v377_v25  ;;  %v876_v28 = vpop.f32.mrf.mxu2  ;;  %1095 = vmatpush.msrb.mxu0 %v552_v22 }
 0x101   : > { %v877_v30 = vadd.f32 %v876_v28, %v761_v24  ;;  %v414_v28 = vld [vmem:[%s2406_s5 + $0x600] sm:$0xff]  ;;  %1328 = vmatpush.msrb.mxu2 %v583_v52 }
 0x102   : > { %v647_v31 = vpop.f32.mrf.mxu0 }
 0x103   : > { %v648_v34 = vadd.f32 %v2792_v40, %v647_v31  ;;  %v992_v35 = vpop.f32.mrf.mxu3  ;;  %1329 = vmatpush.msrb.mxu2 %v582_v21 }
 0x104   : > { %v2847_v36 = vadd.f32 %v992_v35, %v877_v30  ;;  %v763_v37 = vpop.f32.mrf.mxu1 }
 0x105   : > { %v764_v39 = vadd.f32 %v763_v37, %v648_v34  ;;  %694 = vmatmul.f32.gmra.mxu0 %v382_v32  ;;  %926 = vmatmul.f32.gmra.mxu2 %v384_v33  ;;  %v415_v34 = vld [vmem:[%s2406_s5 + $0x608] sm:$0xff]  ;;  %v417_v37 = vld [vmem:[%s2406_s5 + $0x618] sm:$0xff] }
 0x107   : > { %810 = vmatmul.f32.gmra.mxu1 %v383_v38 }
 0x108   : > { %1042 = vmatmul.f32.gmra.mxu3 %v385_v41  ;;  %v879_v42 = vpop.f32.mrf.mxu2 }
 0x109   : > { %v880_v43 = vadd.f32 %v879_v42, %v764_v39  ;;  %v422_v42 = vld [vmem:[%s2406_s5 + $0x640] sm:$0xff] }
 0x10a   : > { %v650_v44 = vpop.f32.mrf.mxu0 }
 0x10b   : > { %v651_v47 = vadd.f32 %v2792_v40, %v650_v44  ;;  %v995_v48 = vpop.f32.mrf.mxu3 }
 0x10c   : > { %v2854_v49 = vadd.f32 %v995_v48, %v880_v43  ;;  %v766_v50 = vpop.f32.mrf.mxu1  ;;  %v424_v43 = vld [vmem:[%s2406_s5 + $0x650] sm:$0xff]  ;;  %v423_v48 = vld [vmem:[%s2406_s5 + $0x648] sm:$0xff] }
 0x10d   : > { %v767_v53 = vadd.f32 %v766_v50, %v651_v47  ;;  %697 = vmatmul.f32.gmra.mxu0 %v390_v45  ;;  %929 = vmatmul.f32.gmra.mxu2 %v392_v46 }
 0x10f   : > { %813 = vmatmul.f32.gmra.mxu1 %v391_v51  ;;  %v425_v51 = vld [vmem:[%s2406_s5 + $0x658] sm:$0xff] }
 0x110   : > { %1045 = vmatmul.f32.gmra.mxu3 %v393_v54  ;;  %v882_v58 = vpop.f32.mrf.mxu2  ;;  %v599_v54 = vld [vmem:[%s3409_s1 + $0x388] sm:$0xff] }
 0x111   : > { %v883_v60 = vadd.f32 %v882_v58, %v767_v53  ;;  %v551_v53 = vld [vmem:[%s3409_s1 + $0x208] sm:$0xff]  ;;  %1444 = vmatpush.msrb.mxu3 %v599_v54 }
 0x112   : > { %v653_v61 = vpop.f32.mrf.mxu0  ;;  %1096 = vmatpush.msrb.mxu0 %v551_v53  ;;  %v567_v58 = vld [vmem:[%s3409_s1 + $0x288] sm:$0xff]  ;;  %v457_v53 = vld [vmem:[%s2406_s5 + $0x758] sm:$0xff] }
 0x113   : > { %v654_v0 = vadd.f32 %v2792_v40, %v653_v61  ;;  %v998_v1 = vpop.f32.mrf.mxu3  ;;  %v432_v61 = vld [vmem:[%s2406_s5 + $0x690] sm:$0xff]  ;;  %1212 = vmatpush.msrb.mxu1 %v567_v58  ;;  %v462_v58 = vld [vmem:[%s2406_s5 + $0x780] sm:$0xff] }
 0x114   : > { %v2873_v2 = vadd.f32 %v998_v1, %v883_v60  ;;  %v769_v3 = vpop.f32.mrf.mxu1  ;;  %v430_v60 = vld [vmem:[%s2406_s5 + $0x680] sm:$0xff]  ;;  %1097 = vmatpush.msrb.mxu0 %v550_v23 }
 0x115   : > { %v770_v5 = vadd.f32 %v769_v3, %v654_v0  ;;  %700 = vmatmul.f32.gmra.mxu0 %v398_v62  ;;  %932 = vmatmul.f32.gmra.mxu2 %v400_v63  ;;  %v431_v3 = vld [vmem:[%s2406_s5 + $0x688] sm:$0xff] }
 0x116   : > { %1213 = vmatpush.msrb.mxu1 %v566_v26 }
 0x117   : > { %816 = vmatmul.f32.gmra.mxu1 %v399_v4 }
 0x118   : > { %1048 = vmatmul.f32.gmra.mxu3 %v401_v6  ;;  %v885_v7 = vpop.f32.mrf.mxu2 }
 0x119   : > { %v886_v9 = vadd.f32 %v885_v7, %v770_v5  ;;  %v433_v5 = vld [vmem:[%s2406_s5 + $0x698] sm:$0xff] }
 0x11a   : > { %v656_v10 = vpop.f32.mrf.mxu0 }
 0x11b   : > { %v657_v13 = vadd.f32 %v2792_v40, %v656_v10  ;;  %v1001_v14 = vpop.f32.mrf.mxu3  ;;  %v438_v10 = vld [vmem:[%s2406_s5 + $0x6c0] sm:$0xff] }
 0x11c   : > { %v2880_v15 = vadd.f32 %v1001_v14, %v886_v9  ;;  %v772_v16 = vpop.f32.mrf.mxu1 }
 0x11d   : > { %v773_v18 = vadd.f32 %v772_v16, %v657_v13  ;;  %703 = vmatmul.f32.gmra.mxu0 %v406_v11  ;;  %935 = vmatmul.f32.gmra.mxu2 %v408_v12  ;;  %v440_v11 = vld [vmem:[%s2406_s5 + $0x6d0] sm:$0xff] }
 0x11f   : > { %819 = vmatmul.f32.gmra.mxu1 %v407_v17  ;;  %v439_v17 = vld [vmem:[%s2406_s5 + $0x6c8] sm:$0xff] }
 0x120   : > { %1051 = vmatmul.f32.gmra.mxu3 %v409_v19  ;;  %v888_v24 = vpop.f32.mrf.mxu2  ;;  %v441_v19 = vld [vmem:[%s2406_s5 + $0x6d8] sm:$0xff] }
 0x121   : > { %v889_v25 = vadd.f32 %v888_v24, %v773_v18  ;;  %v598_v24 = vld [vmem:[%s3409_s1 + $0x380] sm:$0xff] }
 0x122   : > { %v659_v27 = vpop.f32.mrf.mxu0  ;;  %1445 = vmatpush.msrb.mxu3 %v598_v24  ;;  %v478_v24 = vld [vmem:[%s2406_s5 + $0x800] sm:$0xff] }
 0x123   : > { %v660_v30 = vadd.f32 %v2792_v40, %v659_v27  ;;  %v1004_v31 = vpop.f32.mrf.mxu3 }
 0x124   : > { %v2899_v32 = vadd.f32 %v1004_v31, %v889_v25  ;;  %v775_v33 = vpop.f32.mrf.mxu1 }
 0x125   : > { %v776_v35 = vadd.f32 %v775_v33, %v660_v30  ;;  %706 = vmatmul.f32.gmra.mxu0 %v414_v28  ;;  %938 = vmatmul.f32.gmra.mxu2 %v416_v29  ;;  %v446_v28 = vld [vmem:[%s2406_s5 + $0x700] sm:$0xff]  ;;  %v448_v29 = vld [vmem:[%s2406_s5 + $0x710] sm:$0xff] }
 0x127   : > { %822 = vmatmul.f32.gmra.mxu1 %v415_v34 }
 0x128   : > { %1054 = vmatmul.f32.gmra.mxu3 %v417_v37  ;;  %v891_v38 = vpop.f32.mrf.mxu2 }
 0x129   : > { %v892_v39 = vadd.f32 %v891_v38, %v776_v35  ;;  %v447_v35 = vld [vmem:[%s2406_s5 + $0x708] sm:$0xff]  ;;  %v449_v38 = vld [vmem:[%s2406_s5 + $0x718] sm:$0xff] }
 0x12a   : > { %v662_v41 = vpop.f32.mrf.mxu0 }
 0x12b   : > { %v663_v44 = vadd.f32 %v2792_v40, %v662_v41  ;;  %v1007_v45 = vpop.f32.mrf.mxu3 }
 0x12c   : > { %v2906_v46 = vadd.f32 %v1007_v45, %v892_v39  ;;  %v778_v47 = vpop.f32.mrf.mxu1 }
 0x12d   : > { %v779_v50 = vadd.f32 %v778_v47, %v663_v44  ;;  %709 = vmatmul.f32.gmra.mxu0 %v422_v42  ;;  %941 = vmatmul.f32.gmra.mxu2 %v424_v43  ;;  %v454_v43 = vld [vmem:[%s2406_s5 + $0x740] sm:$0xff]  ;;  %v456_v44 = vld [vmem:[%s2406_s5 + $0x750] sm:$0xff] }
 0x12f   : > { %825 = vmatmul.f32.gmra.mxu1 %v423_v48 }
 0x130   : > { %1057 = vmatmul.f32.gmra.mxu3 %v425_v51  ;;  %v894_v55 = vpop.f32.mrf.mxu2  ;;  %v455_v51 = vld [vmem:[%s2406_s5 + $0x748] sm:$0xff] }
 0x131   : > { %v895_v57 = vadd.f32 %v894_v55, %v779_v50 }
 0x132   : > { %v665_v59 = vpop.f32.mrf.mxu0 }
 0x133   : > { %v666_v62 = vadd.f32 %v2792_v40, %v665_v59  ;;  %v1010_v63 = vpop.f32.mrf.mxu3  ;;  %v464_v59 = vld [vmem:[%s2406_s5 + $0x790] sm:$0xff] }
 0x134   : > { %v2925_v0 = vadd.f32 %v1010_v63, %v895_v57  ;;  %v781_v1 = vpop.f32.mrf.mxu1 }
 0x135   : > { %v782_v4 = vadd.f32 %v781_v1, %v666_v62  ;;  %712 = vmatmul.f32.gmra.mxu0 %v430_v60  ;;  %944 = vmatmul.f32.gmra.mxu2 %v432_v61  ;;  %v463_v1 = vld [vmem:[%s2406_s5 + $0x788] sm:$0xff] }
 0x137   : > { %828 = vmatmul.f32.gmra.mxu1 %v431_v3 }
 0x138   : > { %1060 = vmatmul.f32.gmra.mxu3 %v433_v5  ;;  %v897_v6 = vpop.f32.mrf.mxu2 }
 0x139   : > { %v898_v7 = vadd.f32 %v897_v6, %v782_v4  ;;  %v465_v4 = vld [vmem:[%s2406_s5 + $0x798] sm:$0xff] }
 0x13a   : > { %v668_v9 = vpop.f32.mrf.mxu0 }
 0x13b   : > { %v669_v12 = vadd.f32 %v2792_v40, %v668_v9  ;;  %v1013_v13 = vpop.f32.mrf.mxu3  ;;  %v470_v9 = vld [vmem:[%s2406_s5 + $0x7c0] sm:$0xff] }
 0x13c   : > { %v2932_v14 = vadd.f32 %v1013_v13, %v898_v7  ;;  %v784_v16 = vpop.f32.mrf.mxu1 }
 0x13d   : > { %v785_v18 = vadd.f32 %v784_v16, %v669_v12  ;;  %715 = vmatmul.f32.gmra.mxu0 %v438_v10  ;;  %947 = vmatmul.f32.gmra.mxu2 %v440_v11  ;;  %v472_v10 = vld [vmem:[%s2406_s5 + $0x7d0] sm:$0xff] }
 0x13f   : > { %831 = vmatmul.f32.gmra.mxu1 %v439_v17  ;;  %v471_v17 = vld [vmem:[%s2406_s5 + $0x7c8] sm:$0xff] }
 0x140   : > { %1063 = vmatmul.f32.gmra.mxu3 %v441_v19  ;;  %v900_v22 = vpop.f32.mrf.mxu2  ;;  %v473_v19 = vld [vmem:[%s2406_s5 + $0x7d8] sm:$0xff] }
 0x141   : > { %v901_v25 = vadd.f32 %v900_v22, %v785_v18 }
 0x142   : > { %v671_v27 = vpop.f32.mrf.mxu0 }
 0x143   : > { %v672_v30 = vadd.f32 %v2792_v40, %v671_v27  ;;  %v1016_v31 = vpop.f32.mrf.mxu3 }
 0x144   : > { %v2951_v33 = vadd.f32 %v1016_v31, %v901_v25  ;;  %v787_v34 = vpop.f32.mrf.mxu1  ;;  %v480_v25 = vld [vmem:[%s2406_s5 + $0x810] sm:$0xff] }
 0x145   : > { %v788_v37 = vadd.f32 %v787_v34, %v672_v30  ;;  %718 = vmatmul.f32.gmra.mxu0 %v446_v28  ;;  %950 = vmatmul.f32.gmra.mxu2 %v448_v29  ;;  %v479_v30 = vld [vmem:[%s2406_s5 + $0x808] sm:$0xff]  ;;  %v481_v34 = vld [vmem:[%s2406_s5 + $0x818] sm:$0xff] }
 0x147   : > { %834 = vmatmul.f32.gmra.mxu1 %v447_v35 }
 0x148   : > { %1066 = vmatmul.f32.gmra.mxu3 %v449_v38  ;;  %v903_v39 = vpop.f32.mrf.mxu2 }
 0x149   : > { %v904_v41 = vadd.f32 %v903_v39, %v788_v37  ;;  %v226_v39 = vld [vmem:[%s2406_s5 + $0x20] sm:$0xff] }
 0x14a   : > { %v674_v42 = vpop.f32.mrf.mxu0 }
 0x14b   : > { %v675_v45 = vadd.f32 %v2792_v40, %v674_v42  ;;  %v1019_v47 = vpop.f32.mrf.mxu3 }
 0x14c   : > { %v2958_v48 = vadd.f32 %v1019_v47, %v904_v41  ;;  %v790_v50 = vpop.f32.mrf.mxu1  ;;  %v228_v41 = vld [vmem:[%s2406_s5 + $0x30] sm:$0xff]  ;;  %v227_v47 = vld [vmem:[%s2406_s5 + $0x28] sm:$0xff] }
 0x14d   : > { %v791_v52 = vadd.f32 %v790_v50, %v675_v45  ;;  %721 = vmatmul.f32.gmra.mxu0 %v454_v43  ;;  %953 = vmatmul.f32.gmra.mxu2 %v456_v44 }
 0x14f   : > { %837 = vmatmul.f32.gmra.mxu1 %v455_v51  ;;  %v229_v51 = vld [vmem:[%s2406_s5 + $0x38] sm:$0xff] }
 0x150   : > { %1069 = vmatmul.f32.gmra.mxu3 %v457_v53  ;;  %v906_v54 = vpop.f32.mrf.mxu2 }
 0x151   : > { %v907_v55 = vadd.f32 %v906_v54, %v791_v52 }
 0x152   : > { %v677_v57 = vpop.f32.mrf.mxu0 }
 0x153   : > { %v678_v60 = vadd.f32 %v2792_v40, %v677_v57  ;;  %v1022_v61 = vpop.f32.mrf.mxu3  ;;  %v236_v57 = vld [vmem:[%s2406_s5 + $0x70] sm:$0xff] }
 0x154   : > { %v2965_v62 = vadd.f32 %v1022_v61, %v907_v55  ;;  %v793_v63 = vpop.f32.mrf.mxu1  ;;  %v234_v55 = vld [vmem:[%s2406_s5 + $0x60] sm:$0xff] }
 0x155   : > { %v794_v3 = vadd.f32 %v793_v63, %v678_v60  ;;  %724 = vmatmul.f32.gmra.mxu0 %v462_v58  ;;  %956 = vmatmul.f32.gmra.mxu2 %v464_v59  ;;  %v235_v63 = vld [vmem:[%s2406_s5 + $0x68] sm:$0xff] }
 0x157   : > { %840 = vmatmul.f32.gmra.mxu1 %v463_v1 }
 0x158   : > { %1072 = vmatmul.f32.gmra.mxu3 %v465_v4  ;;  %v909_v5 = vpop.f32.mrf.mxu2 }
 0x159   : > { %v910_v6 = vadd.f32 %v909_v5, %v794_v3  ;;  %v237_v3 = vld [vmem:[%s2406_s5 + $0x78] sm:$0xff] }
 0x15a   : > { %v680_v7 = vpop.f32.mrf.mxu0 }
 0x15b   : > { %v681_v11 = vadd.f32 %v2792_v40, %v680_v7  ;;  %v1025_v12 = vpop.f32.mrf.mxu3  ;;  %v242_v7 = vld [vmem:[%s2406_s5 + $0xa0] sm:$0xff] }
 0x15c   : > { %v2972_v13 = vadd.f32 %v1025_v12, %v910_v6  ;;  %v796_v16 = vpop.f32.mrf.mxu1 }
 0x15d   : > { %v797_v18 = vadd.f32 %v796_v16, %v681_v11  ;;  %727 = vmatmul.f32.gmra.mxu0 %v470_v9  ;;  %959 = vmatmul.f32.gmra.mxu2 %v472_v10  ;;  %v244_v9 = vld [vmem:[%s2406_s5 + $0xb0] sm:$0xff] }
 0x15f   : > { %843 = vmatmul.f32.gmra.mxu1 %v471_v17  ;;  %v243_v17 = vld [vmem:[%s2406_s5 + $0xa8] sm:$0xff] }
 0x160   : > { %1075 = vmatmul.f32.gmra.mxu3 %v473_v19  ;;  %v912_v21 = vpop.f32.mrf.mxu2  ;;  %v245_v19 = vld [vmem:[%s2406_s5 + $0xb8] sm:$0xff] }
 0x161   : > { %v913_v22 = vadd.f32 %v912_v21, %v797_v18 }
 0x162   : > { %v683_v23 = vpop.f32.mrf.mxu0 }
 0x163   : > { %v684_v26 = vadd.f32 %v2792_v40, %v683_v23  ;;  %v1028_v27 = vpop.f32.mrf.mxu3 }
 0x164   : > { %v2979_v28 = vadd.f32 %v1028_v27, %v913_v22  ;;  %v799_v29 = vpop.f32.mrf.mxu1 }
 0x165   : > { %v800_v31 = vadd.f32 %v799_v29, %v684_v26  ;;  %730 = vmatmul.f32.gmra.mxu0 %v478_v24  ;;  %962 = vmatmul.f32.gmra.mxu2 %v480_v25  ;;  %v250_v24 = vld [vmem:[%s2406_s5 + $0xe0] sm:$0xff]  ;;  %v252_v25 = vld [vmem:[%s2406_s5 + $0xf0] sm:$0xff] }
 0x167   : > { %846 = vmatmul.f32.gmra.mxu1 %v479_v30 }
 0x168   : > { %1078 = vmatmul.f32.gmra.mxu3 %v481_v34  ;;  %v915_v35 = vpop.f32.mrf.mxu2 }
 0x169   : > { %v916_v37 = vadd.f32 %v915_v35, %v800_v31  ;;  %v251_v31 = vld [vmem:[%s2406_s5 + $0xe8] sm:$0xff]  ;;  %v253_v35 = vld [vmem:[%s2406_s5 + $0xf8] sm:$0xff] }
 0x16a   : > { %v686_v38 = vpop.f32.mrf.mxu0 }
 0x16b   : > { %v687_v42 = vadd.f32 %v2792_v40, %v686_v38  ;;  %v1031_v43 = vpop.f32.mrf.mxu3 }
 0x16c   : > { %v2986_v44 = vadd.f32 %v1031_v43, %v916_v37  ;;  %v802_v45 = vpop.f32.mrf.mxu1 }
 0x16d   : > { %v803_v50 = vadd.f32 %v802_v45, %v687_v42  ;;  %1098 = vmatmul.f32.vlgmr.msrb.gmra.mxu0 %v226_v39  ;;  %1330 = vmatmul.f32.vlgmr.msrb.gmra.mxu2 %v228_v41  ;;  %v258_v41 = vld [vmem:[%s2406_s5 + $0x120] sm:$0xff]  ;;  %v260_v42 = vld [vmem:[%s2406_s5 + $0x130] sm:$0xff] }
 0x16f   : > { %1214 = vmatmul.f32.vlgmr.msrb.gmra.mxu1 %v227_v47 }
 0x170   : > { %1446 = vmatmul.f32.vlgmr.msrb.gmra.mxu3 %v229_v51  ;;  %v918_v52 = vpop.f32.mrf.mxu2  ;;  %v259_v51 = vld [vmem:[%s2406_s5 + $0x128] sm:$0xff] }
 0x171   : > { %v919_v53 = vadd.f32 %v918_v52, %v803_v50 }
 0x172   : > { %v689_v54 = vpop.f32.mrf.mxu0 }
 0x173   : > { %v690_v58 = vadd.f32 %v2792_v40, %v689_v54  ;;  %v1034_v59 = vpop.f32.mrf.mxu3 }
 0x174   : > { %v2993_v60 = vadd.f32 %v1034_v59, %v919_v53  ;;  %v805_v61 = vpop.f32.mrf.mxu1  ;;  %v261_v53 = vld [vmem:[%s2406_s5 + $0x138] sm:$0xff]  ;;  %v268_v59 = vld [vmem:[%s2406_s5 + $0x170] sm:$0xff] }
 0x175   : > { %v806_v1 = vadd.f32 %v805_v61, %v690_v58  ;;  %1101 = vmatmul.f32.gmra.mxu0 %v234_v55  ;;  %1333 = vmatmul.f32.gmra.mxu2 %v236_v57  ;;  %v266_v58 = vld [vmem:[%s2406_s5 + $0x160] sm:$0xff] }
 0x177   : > { %1217 = vmatmul.f32.gmra.mxu1 %v235_v63 }
 0x178   : > { %1449 = vmatmul.f32.gmra.mxu3 %v237_v3  ;;  %v921_v4 = vpop.f32.mrf.mxu2 }
 0x179   : > { %v922_v5 = vadd.f32 %v921_v4, %v806_v1  ;;  %v267_v4 = vld [vmem:[%s2406_s5 + $0x168] sm:$0xff] }
 0x17a   : > { %v692_v6 = vpop.f32.mrf.mxu0 }
 0x17b   : > { %v693_v10 = vadd.f32 %v2792_v40, %v692_v6  ;;  %v1037_v11 = vpop.f32.mrf.mxu3  ;;  %v269_v6 = vld [vmem:[%s2406_s5 + $0x178] sm:$0xff] }
 0x17c   : > { %v3000_v12 = vadd.f32 %v1037_v11, %v922_v5  ;;  %v808_v16 = vpop.f32.mrf.mxu1  ;;  %v274_v11 = vld [vmem:[%s2406_s5 + $0x1a0] sm:$0xff] }
 0x17d   : > { %v809_v18 = vadd.f32 %v808_v16, %v693_v10  ;;  %1104 = vmatmul.f32.gmra.mxu0 %v242_v7  ;;  %1336 = vmatmul.f32.gmra.mxu2 %v244_v9  ;;  %v276_v16 = vld [vmem:[%s2406_s5 + $0x1b0] sm:$0xff] }
 0x17f   : > { %1220 = vmatmul.f32.gmra.mxu1 %v243_v17 }
 0x180   : > { %1452 = vmatmul.f32.gmra.mxu3 %v245_v19  ;;  %v924_v21 = vpop.f32.mrf.mxu2 }
 0x181   : > { %v925_v22 = vadd.f32 %v924_v21, %v809_v18 }
 0x182   : > { %v695_v23 = vpop.f32.mrf.mxu0 }
 0x183   : > { %v696_v26 = vadd.f32 %v2792_v40, %v695_v23  ;;  %v1040_v27 = vpop.f32.mrf.mxu3 }
 0x184   : > { %v3007_v29 = vadd.f32 %v1040_v27, %v925_v22  ;;  %v811_v30 = vpop.f32.mrf.mxu1  ;;  %v275_v22 = vld [vmem:[%s2406_s5 + $0x1a8] sm:$0xff] }
 0x185   : > { %v812_v34 = vadd.f32 %v811_v30, %v696_v26  ;;  %1107 = vmatmul.f32.gmra.mxu0 %v250_v24  ;;  %1339 = vmatmul.f32.gmra.mxu2 %v252_v25  ;;  %v277_v24 = vld [vmem:[%s2406_s5 + $0x1b8] sm:$0xff]  ;;  %v282_v30 = vld [vmem:[%s2406_s5 + $0x1e0] sm:$0xff] }
 0x187   : > { %1223 = vmatmul.f32.gmra.mxu1 %v251_v31  ;;  %v284_v31 = vld [vmem:[%s2406_s5 + $0x1f0] sm:$0xff] }
 0x188   : > { %1455 = vmatmul.f32.gmra.mxu3 %v253_v35  ;;  %v927_v37 = vpop.f32.mrf.mxu2 }
 0x189   : > { %v928_v38 = vadd.f32 %v927_v37, %v812_v34 }
 0x18a   : > { %v698_v39 = vpop.f32.mrf.mxu0 }
 0x18b   : > { %v699_v43 = vadd.f32 %v2792_v40, %v698_v39  ;;  %v1043_v45 = vpop.f32.mrf.mxu3  ;;  %v283_v39 = vld [vmem:[%s2406_s5 + $0x1e8] sm:$0xff] }
 0x18c   : > { %v3014_v47 = vadd.f32 %v1043_v45, %v928_v38  ;;  %v814_v50 = vpop.f32.mrf.mxu1 }
 0x18d   : > { %v815_v52 = vadd.f32 %v814_v50, %v699_v43  ;;  %1110 = vmatmul.f32.gmra.mxu0 %v258_v41  ;;  %1342 = vmatmul.f32.gmra.mxu2 %v260_v42  ;;  %v285_v42 = vld [vmem:[%s2406_s5 + $0x1f8] sm:$0xff] }
 0x18f   : > { %1226 = vmatmul.f32.gmra.mxu1 %v259_v51  ;;  %v290_v51 = vld [vmem:[%s2406_s5 + $0x220] sm:$0xff] }
 0x190   : > { %1458 = vmatmul.f32.gmra.mxu3 %v261_v53  ;;  %v930_v54 = vpop.f32.mrf.mxu2 }
 0x191   : > { %v931_v55 = vadd.f32 %v930_v54, %v815_v52  ;;  %v292_v52 = vld [vmem:[%s2406_s5 + $0x230] sm:$0xff] }
 0x192   : > { %v701_v57 = vpop.f32.mrf.mxu0 }
 0x193   : > { %v702_v61 = vadd.f32 %v2792_v40, %v701_v57  ;;  %v1046_v63 = vpop.f32.mrf.mxu3 }
 0x194   : > { %v3021_v1 = vadd.f32 %v1046_v63, %v931_v55  ;;  %v817_v3 = vpop.f32.mrf.mxu1 }
 0x195   : > { %v818_v5 = vadd.f32 %v817_v3, %v702_v61  ;;  %1113 = vmatmul.f32.gmra.mxu0 %v266_v58  ;;  %1345 = vmatmul.f32.gmra.mxu2 %v268_v59  ;;  %v291_v58 = vld [vmem:[%s2406_s5 + $0x228] sm:$0xff]  ;;  %v293_v61 = vld [vmem:[%s2406_s5 + $0x238] sm:$0xff] }
 0x197   : > { %1229 = vmatmul.f32.gmra.mxu1 %v267_v4 }
 0x198   : > { %1461 = vmatmul.f32.gmra.mxu3 %v269_v6  ;;  %v933_v7 = vpop.f32.mrf.mxu2  ;;  %v300_v6 = vld [vmem:[%s2406_s5 + $0x270] sm:$0xff] }
 0x199   : > { %v934_v9 = vadd.f32 %v933_v7, %v818_v5  ;;  %v298_v5 = vld [vmem:[%s2406_s5 + $0x260] sm:$0xff] }
 0x19a   : > { %v704_v10 = vpop.f32.mrf.mxu0 }
 0x19b   : > { %v705_v17 = vadd.f32 %v2792_v40, %v704_v10  ;;  %v1049_v18 = vpop.f32.mrf.mxu3 }
 0x19c   : > { %v3028_v19 = vadd.f32 %v1049_v18, %v934_v9  ;;  %v820_v21 = vpop.f32.mrf.mxu1  ;;  %v301_v18 = vld [vmem:[%s2406_s5 + $0x278] sm:$0xff] }
 0x19d   : > { %v821_v23 = vadd.f32 %v820_v21, %v705_v17  ;;  %1116 = vmatmul.f32.gmra.mxu0 %v274_v11  ;;  %1348 = vmatmul.f32.gmra.mxu2 %v276_v16  ;;  %v299_v16 = vld [vmem:[%s2406_s5 + $0x268] sm:$0xff] }
 0x19f   : > { %1232 = vmatmul.f32.gmra.mxu1 %v275_v22 }
 0x1a0   : > { %1464 = vmatmul.f32.gmra.mxu3 %v277_v24  ;;  %v936_v25 = vpop.f32.mrf.mxu2  ;;  %v306_v24 = vld [vmem:[%s2406_s5 + $0x2a0] sm:$0xff] }
 0x1a1   : > { %v937_v26 = vadd.f32 %v936_v25, %v821_v23  ;;  %v308_v25 = vld [vmem:[%s2406_s5 + $0x2b0] sm:$0xff] }
 0x1a2   : > { %v707_v27 = vpop.f32.mrf.mxu0 }
 0x1a3   : > { %v708_v34 = vadd.f32 %v2792_v40, %v707_v27  ;;  %v1052_v35 = vpop.f32.mrf.mxu3 }
 0x1a4   : > { %v3035_v37 = vadd.f32 %v1052_v35, %v937_v26  ;;  %v823_v38 = vpop.f32.mrf.mxu1 }
 0x1a5   : > { %v824_v41 = vadd.f32 %v823_v38, %v708_v34  ;;  %1119 = vmatmul.f32.gmra.mxu0 %v282_v30  ;;  %1351 = vmatmul.f32.gmra.mxu2 %v284_v31  ;;  %v307_v34 = vld [vmem:[%s2406_s5 + $0x2a8] sm:$0xff]  ;;  %v309_v38 = vld [vmem:[%s2406_s5 + $0x2b8] sm:$0xff] }
 0x1a7   : > { %1235 = vmatmul.f32.gmra.mxu1 %v283_v39 }
 0x1a8   : > { %1467 = vmatmul.f32.gmra.mxu3 %v285_v42  ;;  %v939_v43 = vpop.f32.mrf.mxu2 }
 0x1a9   : > { %v940_v45 = vadd.f32 %v939_v43, %v824_v41  ;;  %v314_v43 = vld [vmem:[%s2406_s5 + $0x2e0] sm:$0xff] }
 0x1aa   : > { %v710_v50 = vpop.f32.mrf.mxu0 }
 0x1ab   : > { %v711_v53 = vadd.f32 %v2792_v40, %v710_v50  ;;  %v1055_v54 = vpop.f32.mrf.mxu3 }
 0x1ac   : > { %v3042_v55 = vadd.f32 %v1055_v54, %v940_v45  ;;  %v826_v57 = vpop.f32.mrf.mxu1  ;;  %v316_v45 = vld [vmem:[%s2406_s5 + $0x2f0] sm:$0xff]  ;;  %v315_v54 = vld [vmem:[%s2406_s5 + $0x2e8] sm:$0xff] }
 0x1ad   : > { %v827_v59 = vadd.f32 %v826_v57, %v711_v53  ;;  %1122 = vmatmul.f32.gmra.mxu0 %v290_v51  ;;  %1354 = vmatmul.f32.gmra.mxu2 %v292_v52 }
 0x1af   : > { %1238 = vmatmul.f32.gmra.mxu1 %v291_v58  ;;  %v317_v58 = vld [vmem:[%s2406_s5 + $0x2f8] sm:$0xff] }
 0x1b0   : > { %1470 = vmatmul.f32.gmra.mxu3 %v293_v61  ;;  %v942_v63 = vpop.f32.mrf.mxu2 }
 0x1b1   : > { %v943_v3 = vadd.f32 %v942_v63, %v827_v59 }
 0x1b2   : > { %v713_v4 = vpop.f32.mrf.mxu0 }
 0x1b3   : > { %v714_v7 = vadd.f32 %v2792_v40, %v713_v4  ;;  %v1058_v9 = vpop.f32.mrf.mxu3  ;;  %v324_v4 = vld [vmem:[%s2406_s5 + $0x330] sm:$0xff] }
 0x1b4   : > { %v3049_v10 = vadd.f32 %v1058_v9, %v943_v3  ;;  %v829_v11 = vpop.f32.mrf.mxu1  ;;  %v322_v3 = vld [vmem:[%s2406_s5 + $0x320] sm:$0xff] }
 0x1b5   : > { %v830_v17 = vadd.f32 %v829_v11, %v714_v7  ;;  %1125 = vmatmul.f32.gmra.mxu0 %v298_v5  ;;  %1357 = vmatmul.f32.gmra.mxu2 %v300_v6  ;;  %v323_v11 = vld [vmem:[%s2406_s5 + $0x328] sm:$0xff] }
 0x1b7   : > { %1241 = vmatmul.f32.gmra.mxu1 %v299_v16 }
 0x1b8   : > { %1473 = vmatmul.f32.gmra.mxu3 %v301_v18  ;;  %v945_v21 = vpop.f32.mrf.mxu2 }
 0x1b9   : > { %v946_v22 = vadd.f32 %v945_v21, %v830_v17  ;;  %v325_v17 = vld [vmem:[%s2406_s5 + $0x338] sm:$0xff] }
 0x1ba   : > { %v716_v23 = vpop.f32.mrf.mxu0 }
 0x1bb   : > { %v717_v26 = vadd.f32 %v2792_v40, %v716_v23  ;;  %v1061_v27 = vpop.f32.mrf.mxu3  ;;  %v330_v23 = vld [vmem:[%s2406_s5 + $0x360] sm:$0xff] }
 0x1bc   : > { %v3056_v30 = vadd.f32 %v1061_v27, %v946_v22  ;;  %v832_v31 = vpop.f32.mrf.mxu1 }
 0x1bd   : > { %v833_v35 = vadd.f32 %v832_v31, %v717_v26  ;;  %1128 = vmatmul.f32.gmra.mxu0 %v306_v24  ;;  %1360 = vmatmul.f32.gmra.mxu2 %v308_v25  ;;  %v332_v24 = vld [vmem:[%s2406_s5 + $0x370] sm:$0xff] }
 0x1bf   : > { %1244 = vmatmul.f32.gmra.mxu1 %v307_v34  ;;  %v331_v34 = vld [vmem:[%s2406_s5 + $0x368] sm:$0xff] }
 0x1c0   : > { %1476 = vmatmul.f32.gmra.mxu3 %v309_v38  ;;  %v948_v39 = vpop.f32.mrf.mxu2  ;;  %v333_v38 = vld [vmem:[%s2406_s5 + $0x378] sm:$0xff] }
 0x1c1   : > { %v949_v41 = vadd.f32 %v948_v39, %v833_v35 }
 0x1c2   : > { %v719_v42 = vpop.f32.mrf.mxu0 }
 0x1c3   : > { %v720_v50 = vadd.f32 %v2792_v40, %v719_v42  ;;  %v1064_v51 = vpop.f32.mrf.mxu3  ;;  %v2090_v40 = vld [vmem:[#allocation4] ss:$0 sm:$0xff] }
 0x1c4   : > { %v3063_v52 = vadd.f32 %v1064_v51, %v949_v41  ;;  %v835_v53 = vpop.f32.mrf.mxu1 }
 0x1c5   : > { %v836_v57 = vadd.f32 %v835_v53, %v720_v50  ;;  %1131 = vmatmul.f32.gmra.mxu0 %v314_v43  ;;  %1363 = vmatmul.f32.gmra.mxu2 %v316_v45  ;;  %v338_v43 = vld [vmem:[%s2406_s5 + $0x3a0] sm:$0xff]  ;;  %v340_v45 = vld [vmem:[%s2406_s5 + $0x3b0] sm:$0xff] }
 0x1c7   : > { %1247 = vmatmul.f32.gmra.mxu1 %v315_v54 }
 0x1c8   : > { %1479 = vmatmul.f32.gmra.mxu3 %v317_v58  ;;  %v951_v59 = vpop.f32.mrf.mxu2 }
 0x1c9   : > { %v952_v61 = vadd.f32 %v951_v59, %v836_v57  ;;  %v339_v57 = vld [vmem:[%s2406_s5 + $0x3a8] sm:$0xff]  ;;  %v341_v59 = vld [vmem:[%s2406_s5 + $0x3b8] sm:$0xff] }
 0x1ca   : > { %v722_v63 = vpop.f32.mrf.mxu0 }
 0x1cb   : > { %v723_v5 = vadd.f32 %v2090_v40, %v722_v63  ;;  %v1067_v6 = vpop.f32.mrf.mxu3 }
 0x1cc   : > { %v3069_v7 = vadd.f32 %v1067_v6, %v952_v61  ;;  %v838_v9 = vpop.f32.mrf.mxu1 }
 0x1cd   : > { %v839_v16 = vadd.f32 %v838_v9, %v723_v5  ;;  %1134 = vmatmul.f32.gmra.mxu0 %v322_v3  ;;  %1366 = vmatmul.f32.gmra.mxu2 %v324_v4  ;;  %v346_v4 = vld [vmem:[%s2406_s5 + $0x3e0] sm:$0xff]  ;;  %v348_v5 = vld [vmem:[%s2406_s5 + $0x3f0] sm:$0xff] }
 0x1cf   : > { %1250 = vmatmul.f32.gmra.mxu1 %v323_v11 }
 0x1d0   : > { %1482 = vmatmul.f32.gmra.mxu3 %v325_v17  ;;  %v954_v18 = vpop.f32.mrf.mxu2  ;;  %v347_v17 = vld [vmem:[%s2406_s5 + $0x3e8] sm:$0xff] }
 0x1d1   : > { %v955_v21 = vadd.f32 %v954_v18, %v839_v16 }
 0x1d2   : > { %v725_v22 = vpop.f32.mrf.mxu0 }
 0x1d3   : > { %v726_v25 = vadd.f32 %v2090_v40, %v725_v22  ;;  %v1070_v26 = vpop.f32.mrf.mxu3 }
 0x1d4   : > { %v3075_v27 = vadd.f32 %v1070_v26, %v955_v21  ;;  %v841_v31 = vpop.f32.mrf.mxu1  ;;  %v349_v21 = vld [vmem:[%s2406_s5 + $0x3f8] sm:$0xff]  ;;  %v356_v26 = vld [vmem:[%s2406_s5 + $0x430] sm:$0xff] }
 0x1d5   : > { %v842_v35 = vadd.f32 %v841_v31, %v726_v25  ;;  %1137 = vmatmul.f32.gmra.mxu0 %v330_v23  ;;  %1369 = vmatmul.f32.gmra.mxu2 %v332_v24  ;;  %v354_v25 = vld [vmem:[%s2406_s5 + $0x420] sm:$0xff] }
 0x1d7   : > { %1253 = vmatmul.f32.gmra.mxu1 %v331_v34 }
 0x1d8   : > { %1485 = vmatmul.f32.gmra.mxu3 %v333_v38  ;;  %v957_v39 = vpop.f32.mrf.mxu2  ;;  %v355_v38 = vld [vmem:[%s2406_s5 + $0x428] sm:$0xff] }
 0x1d9   : > { %v958_v41 = vadd.f32 %v957_v39, %v842_v35  ;;  %v357_v39 = vld [vmem:[%s2406_s5 + $0x438] sm:$0xff] }
 0x1da   : > { %v728_v42 = vpop.f32.mrf.mxu0 }
 0x1db   : > { %v729_v50 = vadd.f32 %v2090_v40, %v728_v42  ;;  %v1073_v51 = vpop.f32.mrf.mxu3 }
 0x1dc   : > { %v3081_v53 = vadd.f32 %v1073_v51, %v958_v41  ;;  %v844_v54 = vpop.f32.mrf.mxu1  ;;  %v364_v51 = vld [vmem:[%s2406_s5 + $0x470] sm:$0xff] }
 0x1dd   : > { %v845_v58 = vadd.f32 %v844_v54, %v729_v50  ;;  %1140 = vmatmul.f32.gmra.mxu0 %v338_v43  ;;  %1372 = vmatmul.f32.gmra.mxu2 %v340_v45  ;;  %v362_v50 = vld [vmem:[%s2406_s5 + $0x460] sm:$0xff] }
 0x1df   : > { %1256 = vmatmul.f32.gmra.mxu1 %v339_v57 }
 0x1e0   : > { %1488 = vmatmul.f32.gmra.mxu3 %v341_v59  ;;  %v960_v61 = vpop.f32.mrf.mxu2  ;;  %v363_v59 = vld [vmem:[%s2406_s5 + $0x468] sm:$0xff] }
 0x1e1   : > { %v961_v63 = vadd.f32 %v960_v61, %v845_v58  ;;  %v365_v61 = vld [vmem:[%s2406_s5 + $0x478] sm:$0xff] }
 0x1e2   : > { %v731_v3 = vpop.f32.mrf.mxu0 }
 0x1e3   : > { %v732_v6 = vadd.f32 %v2090_v40, %v731_v3  ;;  %v1076_v9 = vpop.f32.mrf.mxu3 }
 0x1e4   : > { %v3087_v11 = vadd.f32 %v1076_v9, %v961_v63  ;;  %v847_v16 = vpop.f32.mrf.mxu1 }
 0x1e5   : > { %v848_v18 = vadd.f32 %v847_v16, %v732_v6  ;;  %1143 = vmatmul.f32.gmra.mxu0 %v346_v4  ;;  %1375 = vmatmul.f32.gmra.mxu2 %v348_v5  ;;  %v370_v5 = vld [vmem:[%s2406_s5 + $0x4a0] sm:$0xff]  ;;  %v372_v6 = vld [vmem:[%s2406_s5 + $0x4b0] sm:$0xff] }
 0x1e7   : > { %1259 = vmatmul.f32.gmra.mxu1 %v347_v17 }
 0x1e8   : > { %1491 = vmatmul.f32.gmra.mxu3 %v349_v21  ;;  %v963_v22 = vpop.f32.mrf.mxu2  ;;  %v371_v21 = vld [vmem:[%s2406_s5 + $0x4a8] sm:$0xff] }
 0x1e9   : > { %v964_v23 = vadd.f32 %v963_v22, %v848_v18  ;;  %v373_v22 = vld [vmem:[%s2406_s5 + $0x4b8] sm:$0xff] }
 0x1ea   : > { %v1099_v24 = vpop.f32.mrf.mxu0 }
 0x1eb   : > { %v1079_v40 = vpop.f32.mrf.mxu3  ;;  %v1100_v31 = vadd.f32 %v1099_v24, %v2802_v56 }
 0x1ec   : > { %v3094_v34 = vadd.f32 %v1079_v40, %v964_v23  ;;  %v1215_v35 = vpop.f32.mrf.mxu1  ;;  %v380_v40 = vld [vmem:[%s2406_s5 + $0x4f0] sm:$0xff] }
 0x1ed   : > { %1146 = vmatmul.f32.gmra.mxu0 %v354_v25  ;;  %1378 = vmatmul.f32.gmra.mxu2 %v356_v26  ;;  %v1216_v41 = vadd.f32 %v1215_v35, %v1100_v31 }
 0x1ef   : > { %1262 = vmatmul.f32.gmra.mxu1 %v355_v38 }
 0x1f0   : > { %1494 = vmatmul.f32.gmra.mxu3 %v357_v39  ;;  %v1331_v42 = vpop.f32.mrf.mxu2 }
 0x1f1   : > { %v1332_v43 = vadd.f32 %v1331_v42, %v1216_v41  ;;  %v379_v41 = vld [vmem:[%s2406_s5 + $0x4e8] sm:$0xff]  ;;  %v381_v42 = vld [vmem:[%s2406_s5 + $0x4f8] sm:$0xff] }
 0x1f2   : > { %v1102_v45 = vpop.f32.mrf.mxu0 }
 0x1f3   : > { %v1103_v56 = vadd.f32 %v1102_v45, %v2821_v8  ;;  %v1447_v54 = vpop.f32.mrf.mxu3 }
 0x1f4   : > { %v1448_v57 = vadd.f32 %v1447_v54, %v1332_v43  ;;  %v1218_v58 = vpop.f32.mrf.mxu1 }
 0x1f5   : > { %1149 = vmatmul.f32.gmra.mxu0 %v362_v50  ;;  %1381 = vmatmul.f32.gmra.mxu2 %v364_v51  ;;  %v1219_v63 = vadd.f32 %v1218_v58, %v1103_v56  ;;  %v388_v56 = vld [vmem:[%s2406_s5 + $0x530] sm:$0xff] }
 0x1f6   : > { %1547 = vst.msk [vmem:[%s3104_s30] sm:$0xff] %vm1546_vm0, %v1448_v57 }
 0x1f7   : > { %1265 = vmatmul.f32.gmra.mxu1 %v363_v59 }
 0x1f8   : > { %1497 = vmatmul.f32.gmra.mxu3 %v365_v61  ;;  %v1334_v8 = vpop.f32.mrf.mxu2  ;;  %v387_v61 = vld [vmem:[%s2406_s5 + $0x528] sm:$0xff] }
 0x1f9   : > { %v1335_v3 = vadd.f32 %v1334_v8, %v1219_v63  ;;  %v389_v63 = vld [vmem:[%s2406_s5 + $0x538] sm:$0xff] }
 0x1fa   : > { %v1105_v4 = vpop.f32.mrf.mxu0 }
 0x1fb   : > { %v1106_v9 = vadd.f32 %v1105_v4, %v2828_v20  ;;  %v1450_v16 = vpop.f32.mrf.mxu3  ;;  %v378_v20 = vld [vmem:[%s2406_s5 + $0x4e0] sm:$0xff] }
 0x1fc   : > { %v1451_v17 = vadd.f32 %v1450_v16, %v1335_v3  ;;  %v1221_v18 = vpop.f32.mrf.mxu1 }
 0x1fd   : > { %1152 = vmatmul.f32.gmra.mxu0 %v370_v5  ;;  %1384 = vmatmul.f32.gmra.mxu2 %v372_v6  ;;  %v1222_v23 = vadd.f32 %v1221_v18, %v1106_v9  ;;  %v396_v6 = vld [vmem:[%s2406_s5 + $0x570] sm:$0xff] }
 0x1fe   : > { %1548 = vst.msk [vmem:[%s3104_s30 + $0x8] sm:$0xff] %vm1546_vm0, %v1451_v17 }
 0x1ff   : > { %1268 = vmatmul.f32.gmra.mxu1 %v371_v21  ;;  %v395_v21 = vld [vmem:[%s2406_s5 + $0x568] sm:$0xff] }
 0x200   : > { %1500 = vmatmul.f32.gmra.mxu3 %v373_v22  ;;  %v1337_v24 = vpop.f32.mrf.mxu2  ;;  %v397_v22 = vld [vmem:[%s2406_s5 + $0x578] sm:$0xff] }
 0x201   : > { %v1338_v25 = vadd.f32 %v1337_v24, %v1222_v23 }
 0x202   : > { %v1108_v26 = vpop.f32.mrf.mxu0 }
 0x203   : > { %v1109_v31 = vadd.f32 %v1108_v26, %v2847_v36  ;;  %v1453_v35 = vpop.f32.mrf.mxu3  ;;  %v386_v36 = vld [vmem:[%s2406_s5 + $0x520] sm:$0xff] }
 0x204   : > { %v1454_v38 = vadd.f32 %v1453_v35, %v1338_v25  ;;  %v1224_v39 = vpop.f32.mrf.mxu1 }
 0x205   : > { %1155 = vmatmul.f32.gmra.mxu0 %v378_v20  ;;  %1387 = vmatmul.f32.gmra.mxu2 %v380_v40  ;;  %v1225_v43 = vadd.f32 %v1224_v39, %v1109_v31  ;;  %v404_v20 = vld [vmem:[%s2406_s5 + $0x5b0] sm:$0xff]  ;;  %v403_v39 = vld [vmem:[%s2406_s5 + $0x5a8] sm:$0xff] }
 0x206   : > { %1549 = vst.msk [vmem:[%s3104_s30 + $0x10] sm:$0xff] %vm1546_vm0, %v1454_v38 }
 0x207   : > { %1271 = vmatmul.f32.gmra.mxu1 %v379_v41  ;;  %v405_v41 = vld [vmem:[%s2406_s5 + $0x5b8] sm:$0xff] }
 0x208   : > { %1503 = vmatmul.f32.gmra.mxu3 %v381_v42  ;;  %v1340_v45 = vpop.f32.mrf.mxu2 }
 0x209   : > { %v1341_v50 = vadd.f32 %v1340_v45, %v1225_v43 }
 0x20a   : > { %v1111_v51 = vpop.f32.mrf.mxu0 }
 0x20b   : > { %v1112_v54 = vadd.f32 %v1111_v51, %v2854_v49  ;;  %v1456_v57 = vpop.f32.mrf.mxu3  ;;  %v394_v49 = vld [vmem:[%s2406_s5 + $0x560] sm:$0xff]  ;;  %v412_v51 = vld [vmem:[%s2406_s5 + $0x5f0] sm:$0xff] }
 0x20c   : > { %v1457_v58 = vadd.f32 %v1456_v57, %v1341_v50  ;;  %v1227_v59 = vpop.f32.mrf.mxu1 }
 0x20d   : > { %1158 = vmatmul.f32.gmra.mxu0 %v386_v36  ;;  %1390 = vmatmul.f32.gmra.mxu2 %v388_v56  ;;  %v1228_v8 = vadd.f32 %v1227_v59, %v1112_v54  ;;  %v413_v59 = vld [vmem:[%s2406_s5 + $0x5f8] sm:$0xff] }
 0x20e   : > { %1550 = vst.msk [vmem:[%s3104_s30 + $0x18] sm:$0xff] %vm1546_vm0, %v1457_v58  ;;  %v411_v58 = vld [vmem:[%s2406_s5 + $0x5e8] sm:$0xff] }
 0x20f   : > { %1274 = vmatmul.f32.gmra.mxu1 %v387_v61 }
 0x210   : > { %1506 = vmatmul.f32.gmra.mxu3 %v389_v63  ;;  %v1343_v3 = vpop.f32.mrf.mxu2 }
 0x211   : > { %v1344_v4 = vadd.f32 %v1343_v3, %v1228_v8 }
 0x212   : > { %v1114_v5 = vpop.f32.mrf.mxu0 }
 0x213   : > { %v1115_v9 = vadd.f32 %v1114_v5, %v2873_v2  ;;  %v1459_v16 = vpop.f32.mrf.mxu3  ;;  %v402_v2 = vld [vmem:[%s2406_s5 + $0x5a0] sm:$0xff] }
 0x214   : > { %v1460_v17 = vadd.f32 %v1459_v16, %v1344_v4  ;;  %v1230_v18 = vpop.f32.mrf.mxu1  ;;  %v420_v4 = vld [vmem:[%s2406_s5 + $0x630] sm:$0xff]  ;;  %v419_v16 = vld [vmem:[%s2406_s5 + $0x628] sm:$0xff] }
 0x215   : > { %1161 = vmatmul.f32.gmra.mxu0 %v394_v49  ;;  %1393 = vmatmul.f32.gmra.mxu2 %v396_v6  ;;  %v1231_v23 = vadd.f32 %v1230_v18, %v1115_v9 }
 0x216   : > { %1551 = vst.msk [vmem:[%s3104_s30 + $0x20] sm:$0xff] %vm1546_vm0, %v1460_v17  ;;  %v421_v17 = vld [vmem:[%s2406_s5 + $0x638] sm:$0xff] }
 0x217   : > { %1277 = vmatmul.f32.gmra.mxu1 %v395_v21 }
 0x218   : > { %1509 = vmatmul.f32.gmra.mxu3 %v397_v22  ;;  %v1346_v24 = vpop.f32.mrf.mxu2 }
 0x219   : > { %v1347_v25 = vadd.f32 %v1346_v24, %v1231_v23  ;;  %v428_v24 = vld [vmem:[%s2406_s5 + $0x670] sm:$0xff] }
 0x21a   : > { %v1117_v26 = vpop.f32.mrf.mxu0 }
 0x21b   : > { %v1118_v40 = vadd.f32 %v1117_v26, %v2880_v15  ;;  %v1462_v31 = vpop.f32.mrf.mxu3  ;;  %v410_v15 = vld [vmem:[%s2406_s5 + $0x5e0] sm:$0xff] }
 0x21c   : > { %v1463_v35 = vadd.f32 %v1462_v31, %v1347_v25  ;;  %v1233_v38 = vpop.f32.mrf.mxu1  ;;  %v429_v31 = vld [vmem:[%s2406_s5 + $0x678] sm:$0xff] }
 0x21d   : > { %1164 = vmatmul.f32.gmra.mxu0 %v402_v2  ;;  %1396 = vmatmul.f32.gmra.mxu2 %v404_v20  ;;  %v1234_v42 = vadd.f32 %v1233_v38, %v1118_v40  ;;  %v427_v40 = vld [vmem:[%s2406_s5 + $0x668] sm:$0xff] }
 0x21e   : > { %1552 = vst.msk [vmem:[%s3104_s30 + $0x28] sm:$0xff] %vm1546_vm0, %v1463_v35 }
 0x21f   : > { %1280 = vmatmul.f32.gmra.mxu1 %v403_v39 }
 0x220   : > { %1512 = vmatmul.f32.gmra.mxu3 %v405_v41  ;;  %v1349_v43 = vpop.f32.mrf.mxu2 }
 0x221   : > { %v1350_v45 = vadd.f32 %v1349_v43, %v1234_v42  ;;  %v436_v42 = vld [vmem:[%s2406_s5 + $0x6b0] sm:$0xff] }
 0x222   : > { %v1120_v50 = vpop.f32.mrf.mxu0 }
 0x223   : > { %v1121_v36 = vadd.f32 %v1120_v50, %v2899_v32  ;;  %v1465_v56 = vpop.f32.mrf.mxu3  ;;  %v418_v32 = vld [vmem:[%s2406_s5 + $0x620] sm:$0xff] }
 0x224   : > { %v1466_v54 = vadd.f32 %v1465_v56, %v1350_v45  ;;  %v1236_v57 = vpop.f32.mrf.mxu1 }
 0x225   : > { %1167 = vmatmul.f32.gmra.mxu0 %v410_v15  ;;  %1399 = vmatmul.f32.gmra.mxu2 %v412_v51  ;;  %v1237_v61 = vadd.f32 %v1236_v57, %v1121_v36  ;;  %v435_v51 = vld [vmem:[%s2406_s5 + $0x6a8] sm:$0xff]  ;;  %v437_v36 = vld [vmem:[%s2406_s5 + $0x6b8] sm:$0xff] }
 0x226   : > { %1553 = vst.msk [vmem:[%s3104_s30 + $0x30] sm:$0xff] %vm1546_vm0, %v1466_v54 }
 0x227   : > { %1283 = vmatmul.f32.gmra.mxu1 %v411_v58 }
 0x228   : > { %1515 = vmatmul.f32.gmra.mxu3 %v413_v59  ;;  %v1352_v63 = vpop.f32.mrf.mxu2  ;;  %v444_v59 = vld [vmem:[%s2406_s5 + $0x6f0] sm:$0xff] }
 0x229   : > { %v1353_v8 = vadd.f32 %v1352_v63, %v1237_v61 }
 0x22a   : > { %v1123_v3 = vpop.f32.mrf.mxu0 }
 0x22b   : > { %v1124_v5 = vadd.f32 %v1123_v3, %v2906_v46  ;;  %v1468_v49 = vpop.f32.mrf.mxu3  ;;  %v426_v46 = vld [vmem:[%s2406_s5 + $0x660] sm:$0xff] }
 0x22c   : > { %v1469_v6 = vadd.f32 %v1468_v49, %v1353_v8  ;;  %v1239_v9 = vpop.f32.mrf.mxu1 }
 0x22d   : > { %1170 = vmatmul.f32.gmra.mxu0 %v418_v32  ;;  %1402 = vmatmul.f32.gmra.mxu2 %v420_v4  ;;  %v1240_v18 = vadd.f32 %v1239_v9, %v1124_v5  ;;  %v443_v32 = vld [vmem:[%s2406_s5 + $0x6e8] sm:$0xff]  ;;  %v445_v4 = vld [vmem:[%s2406_s5 + $0x6f8] sm:$0xff] }
 0x22e   : > { %1554 = vst.msk [vmem:[%s3104_s30 + $0x38] sm:$0xff] %vm1546_vm0, %v1469_v6 }
 0x22f   : > { %1286 = vmatmul.f32.gmra.mxu1 %v419_v16  ;;  %v452_v16 = vld [vmem:[%s2406_s5 + $0x730] sm:$0xff] }
 0x230   : > { %1518 = vmatmul.f32.gmra.mxu3 %v421_v17  ;;  %v1355_v21 = vpop.f32.mrf.mxu2 }
 0x231   : > { %v1356_v22 = vadd.f32 %v1355_v21, %v1240_v18 }
 0x232   : > { %v1126_v23 = vpop.f32.mrf.mxu0 }
 0x233   : > { %v1127_v25 = vadd.f32 %v1126_v23, %v2925_v0  ;;  %v1471_v26 = vpop.f32.mrf.mxu3  ;;  %v434_v0 = vld [vmem:[%s2406_s5 + $0x6a0] sm:$0xff]  ;;  %v451_v23 = vld [vmem:[%s2406_s5 + $0x728] sm:$0xff] }
 0x234   : > { %v1472_v2 = vadd.f32 %v1471_v26, %v1356_v22  ;;  %v1242_v20 = vpop.f32.mrf.mxu1 }
 0x235   : > { %1173 = vmatmul.f32.gmra.mxu0 %v426_v46  ;;  %1405 = vmatmul.f32.gmra.mxu2 %v428_v24  ;;  %v1243_v35 = vadd.f32 %v1242_v20, %v1127_v25  ;;  %v453_v46 = vld [vmem:[%s2406_s5 + $0x738] sm:$0xff]  ;;  %v460_v20 = vld [vmem:[%s2406_s5 + $0x770] sm:$0xff] }
 0x236   : > { %1555 = vst.msk [vmem:[%s3104_s30 + $0x40] sm:$0xff] %vm1546_vm0, %v1472_v2 }
 0x237   : > { %1289 = vmatmul.f32.gmra.mxu1 %v427_v40 }
 0x238   : > { %1521 = vmatmul.f32.gmra.mxu3 %v429_v31  ;;  %v1358_v38 = vpop.f32.mrf.mxu2 }
 0x239   : > { %v1359_v39 = vadd.f32 %v1358_v38, %v1243_v35 }
 0x23a   : > { %v1129_v41 = vpop.f32.mrf.mxu0 }
 0x23b   : > { %v1130_v43 = vadd.f32 %v1129_v41, %v2932_v14  ;;  %v1474_v45 = vpop.f32.mrf.mxu3  ;;  %v442_v14 = vld [vmem:[%s2406_s5 + $0x6e0] sm:$0xff]  ;;  %v461_v41 = vld [vmem:[%s2406_s5 + $0x778] sm:$0xff] }
 0x23c   : > { %v1475_v50 = vadd.f32 %v1474_v45, %v1359_v39  ;;  %v1245_v15 = vpop.f32.mrf.mxu1  ;;  %v459_v39 = vld [vmem:[%s2406_s5 + $0x768] sm:$0xff] }
 0x23d   : > { %1176 = vmatmul.f32.gmra.mxu0 %v434_v0  ;;  %1408 = vmatmul.f32.gmra.mxu2 %v436_v42  ;;  %v1246_v56 = vadd.f32 %v1245_v15, %v1130_v43 }
 0x23e   : > { %1556 = vst.msk [vmem:[%s3104_s30 + $0x48] sm:$0xff] %vm1546_vm0, %v1475_v50  ;;  %v468_v50 = vld [vmem:[%s2406_s5 + $0x7b0] sm:$0xff] }
 0x23f   : > { %1292 = vmatmul.f32.gmra.mxu1 %v435_v51 }
 0x240   : > { %1524 = vmatmul.f32.gmra.mxu3 %v437_v36  ;;  %v1361_v54 = vpop.f32.mrf.mxu2 }
 0x241   : > { %v1362_v57 = vadd.f32 %v1361_v54, %v1246_v56  ;;  %v467_v54 = vld [vmem:[%s2406_s5 + $0x7a8] sm:$0xff] }
 0x242   : > { %v1132_v58 = vpop.f32.mrf.mxu0 }
 0x243   : > { %v1133_v61 = vadd.f32 %v1132_v58, %v2951_v33  ;;  %v1477_v63 = vpop.f32.mrf.mxu3  ;;  %v450_v33 = vld [vmem:[%s2406_s5 + $0x720] sm:$0xff] }
 0x244   : > { %v1478_v8 = vadd.f32 %v1477_v63, %v1362_v57  ;;  %v1248_v3 = vpop.f32.mrf.mxu1  ;;  %v469_v57 = vld [vmem:[%s2406_s5 + $0x7b8] sm:$0xff]  ;;  %v476_v63 = vld [vmem:[%s2406_s5 + $0x7f0] sm:$0xff] }
 0x245   : > { %1179 = vmatmul.f32.gmra.mxu0 %v442_v14  ;;  %1411 = vmatmul.f32.gmra.mxu2 %v444_v59  ;;  %v1249_v5 = vadd.f32 %v1248_v3, %v1133_v61 }
 0x246   : > { %1557 = vst.msk [vmem:[%s3104_s30 + $0x50] sm:$0xff] %vm1546_vm0, %v1478_v8 }
 0x247   : > { %1295 = vmatmul.f32.gmra.mxu1 %v443_v32 }
 0x248   : > { %1527 = vmatmul.f32.gmra.mxu3 %v445_v4  ;;  %v1364_v49 = vpop.f32.mrf.mxu2 }
 0x249   : > { %v1365_v6 = vadd.f32 %v1364_v49, %v1249_v5  ;;  %v475_v5 = vld [vmem:[%s2406_s5 + $0x7e8] sm:$0xff]  ;;  %v477_v49 = vld [vmem:[%s2406_s5 + $0x7f8] sm:$0xff] }
 0x24a   : > { %v1135_v9 = vpop.f32.mrf.mxu0 }
 0x24b   : > { %v1136_v17 = vadd.f32 %v1135_v9, %v2958_v48  ;;  %v1480_v18 = vpop.f32.mrf.mxu3  ;;  %v458_v48 = vld [vmem:[%s2406_s5 + $0x760] sm:$0xff] }
 0x24c   : > { %v1481_v21 = vadd.f32 %v1480_v18, %v1365_v6  ;;  %v1251_v22 = vpop.f32.mrf.mxu1 }
 0x24d   : > { %1182 = vmatmul.f32.gmra.mxu0 %v450_v33  ;;  %1414 = vmatmul.f32.gmra.mxu2 %v452_v16  ;;  %v1252_v24 = vadd.f32 %v1251_v22, %v1136_v17  ;;  %v484_v17 = vld [vmem:[%s2406_s5 + $0x830] sm:$0xff] }
 0x24e   : > { %1558 = vst.msk [vmem:[%s3104_s30 + $0x58] sm:$0xff] %vm1546_vm0, %v1481_v21 }
 0x24f   : > { %1298 = vmatmul.f32.gmra.mxu1 %v451_v23 }
 0x250   : > { %1530 = vmatmul.f32.gmra.mxu3 %v453_v46  ;;  %v1367_v25 = vpop.f32.mrf.mxu2  ;;  %v483_v46 = vld [vmem:[%s2406_s5 + $0x828] sm:$0xff] }
 0x251   : > { %v1368_v26 = vadd.f32 %v1367_v25, %v1252_v24  ;;  %v485_v24 = vld [vmem:[%s2406_s5 + $0x838] sm:$0xff] }
 0x252   : > { %v1138_v2 = vpop.f32.mrf.mxu0 }
 0x253   : > { %v1139_v40 = vadd.f32 %v1138_v2, %v2965_v62  ;;  %v1483_v31 = vpop.f32.mrf.mxu3  ;;  %v466_v62 = vld [vmem:[%s2406_s5 + $0x7a0] sm:$0xff] }
 0x254   : > { %v1484_v35 = vadd.f32 %v1483_v31, %v1368_v26  ;;  %v1254_v38 = vpop.f32.mrf.mxu1 }
 0x255   : > { %1185 = vmatmul.f32.gmra.mxu0 %v458_v48  ;;  %1417 = vmatmul.f32.gmra.mxu2 %v460_v20  ;;  %v1255_v0 = vadd.f32 %v1254_v38, %v1139_v40 }
 0x256   : > { %1559 = vst.msk [vmem:[%s3104_s30 + $0x60] sm:$0xff] %vm1546_vm0, %v1484_v35 }
 0x257   : > { %1301 = vmatmul.f32.gmra.mxu1 %v459_v39 }
 0x258   : > { %1533 = vmatmul.f32.gmra.mxu3 %v461_v41  ;;  %v1370_v42 = vpop.f32.mrf.mxu2 }
 0x259   : > { %v1371_v43 = vadd.f32 %v1370_v42, %v1255_v0 }
 0x25a   : > { %v1141_v45 = vpop.f32.mrf.mxu0 }
 0x25b   : > { %v1142_v15 = vadd.f32 %v1141_v45, %v2972_v13  ;;  %v1486_v51 = vpop.f32.mrf.mxu3  ;;  %v474_v13 = vld [vmem:[%s2406_s5 + $0x7e0] sm:$0xff] }
 0x25c   : > { %v1487_v36 = vadd.f32 %v1486_v51, %v1371_v43  ;;  %v1257_v56 = vpop.f32.mrf.mxu1 }
 0x25d   : > { %1188 = vmatmul.f32.gmra.mxu0 %v466_v62  ;;  %1420 = vmatmul.f32.gmra.mxu2 %v468_v50  ;;  %v1258_v58 = vadd.f32 %v1257_v56, %v1142_v15 }
 0x25e   : > { %1560 = vst.msk [vmem:[%s3104_s30 + $0x68] sm:$0xff] %vm1546_vm0, %v1487_v36 }
 0x25f   : > { %1304 = vmatmul.f32.gmra.mxu1 %v467_v54 }
 0x260   : > { %1536 = vmatmul.f32.gmra.mxu3 %v469_v57  ;;  %v1373_v14 = vpop.f32.mrf.mxu2 }
 0x261   : > { %v1374_v59 = vadd.f32 %v1373_v14, %v1258_v58 }
 0x262   : > { %v1144_v61 = vpop.f32.mrf.mxu0 }
 0x263   : > { %v1145_v8 = vadd.f32 %v1144_v61, %v2979_v28  ;;  %v1489_v3 = vpop.f32.mrf.mxu3  ;;  %v482_v28 = vld [vmem:[%s2406_s5 + $0x820] sm:$0xff]  ;;  %s1587_s5 = smul.u32 (%p2336_p10), 33, %s2307_s16 }
 0x264   : > { %v1490_v32 = vadd.f32 %v1489_v3, %v1374_v59  ;;  %v1260_v4 = vpop.f32.mrf.mxu1 }
 0x265   : > { %1191 = vmatmul.f32.gmra.mxu0 %v474_v13  ;;  %1423 = vmatmul.f32.gmra.mxu2 %v476_v63  ;;  %v1261_v6 = vadd.f32 %v1260_v4, %v1145_v8  ;;  %s1588_s11 = ssub.s32 (%p2336_p10), 65, %s1587_s5 }
 0x266   : > { %1561 = vst.msk [vmem:[%s3104_s30 + $0x70] sm:$0xff] %vm1546_vm0, %v1490_v32  ;;  %p1589_p8 = scmp.lt.s32.totalorder (%p2336_p10), %s1588_s11, 33 }
 0x267   : > { %1307 = vmatmul.f32.gmra.mxu1 %v475_v5 }
 0x268   : > { %1539 = vmatmul.f32.gmra.mxu3 %v477_v49  ;;  %v1376_v9 = vpop.f32.mrf.mxu2 }
 0x269   : > { %v1377_v33 = vadd.f32 %v1376_v9, %v1261_v6 }
 0x26a   : > { %v1147_v16 = vpop.f32.mrf.mxu0 }
 0x26b   : > { %v1148_v18 = vadd.f32 %v1147_v16, %v2986_v44  ;;  %v1492_v21 = vpop.f32.mrf.mxu3 }
 0x26c   : > { %v1493_v22 = vadd.f32 %v1492_v21, %v1377_v33  ;;  %v1263_v23 = vpop.f32.mrf.mxu1 }
 0x26d   : > { %1194 = vmatmul.f32.gmra.mxu0 %v482_v28  ;;  %1426 = vmatmul.f32.gmra.mxu2 %v484_v17  ;;  %v1264_v25 = vadd.f32 %v1263_v23, %v1148_v18 }
 0x26e   : > { %1562 = vst.msk [vmem:[%s3104_s30 + $0x78] sm:$0xff] %vm1546_vm0, %v1493_v22 }
 0x26f   : > { %1310 = vmatmul.f32.gmra.mxu1 %v483_v46 }
 0x270   : > { %1542 = vmatmul.f32.gmra.mxu3 %v485_v24  ;;  %v1379_v26 = vpop.f32.mrf.mxu2 }
 0x271   : > { %v1380_v2 = vadd.f32 %v1379_v26, %v1264_v25 }
 0x272   : > { %v1150_v48 = vpop.f32.mrf.mxu0 }
 0x273   : > { %v1151_v20 = vadd.f32 %v1150_v48, %v2993_v60  ;;  %v1495_v44 = vpop.f32.mrf.mxu3 }
 0x274   : > { %v1496_v40 = vadd.f32 %v1495_v44, %v1380_v2  ;;  %v1266_v31 = vpop.f32.mrf.mxu1 }
 0x275   : > { %v1267_v35 = vadd.f32 %v1266_v31, %v1151_v20 }
 0x276   : > { %1563 = vst.msk [vmem:[%s3104_s30 + $0x80] sm:$0xff] %vm1546_vm0, %v1496_v40 }
 0x278   : > { %v1382_v38 = vpop.f32.mrf.mxu2 }
 0x279   : > { %v1383_v39 = vadd.f32 %v1382_v38, %v1267_v35 }
 0x27a   : > { %v1153_v41 = vpop.f32.mrf.mxu0 }
 0x27b   : > { %v1154_v0 = vadd.f32 %v1153_v41, %v3000_v12  ;;  %v1498_v42 = vpop.f32.mrf.mxu3 }
 0x27c   : > { %v1499_v43 = vadd.f32 %v1498_v42, %v1383_v39  ;;  %v1269_v45 = vpop.f32.mrf.mxu1 }
 0x27d   : > { %v1270_v62 = vadd.f32 %v1269_v45, %v1154_v0 }
 0x27e   : > { %1564 = vst.msk [vmem:[%s3104_s30 + $0x88] sm:$0xff] %vm1546_vm0, %v1499_v43 }
 0x280   : > { %v1385_v50 = vpop.f32.mrf.mxu2 }
 0x281   : > { %v1386_v60 = vadd.f32 %v1385_v50, %v1270_v62 }
 0x282   : > { %v1156_v15 = vpop.f32.mrf.mxu0 }
 0x283   : > { %v1157_v51 = vadd.f32 %v1156_v15, %v3007_v29  ;;  %v1501_v36 = vpop.f32.mrf.mxu3 }
 0x284   : > { %v1502_v56 = vadd.f32 %v1501_v36, %v1386_v60  ;;  %v1272_v54 = vpop.f32.mrf.mxu1 }
 0x285   : > { %v1273_v57 = vadd.f32 %v1272_v54, %v1157_v51 }
 0x286   : > { %1565 = vst.msk [vmem:[%s3104_s30 + $0x90] sm:$0xff] %vm1546_vm0, %v1502_v56 }
 0x288   : > { %v1388_v58 = vpop.f32.mrf.mxu2 }
 0x289   : > { %v1389_v12 = vadd.f32 %v1388_v58, %v1273_v57 }
 0x28a   : > { %v1159_v14 = vpop.f32.mrf.mxu0 }
 0x28b   : > { %v1160_v59 = vadd.f32 %v1159_v14, %v3014_v47  ;;  %v1504_v61 = vpop.f32.mrf.mxu3 }
 0x28c   : > { %v1505_v13 = vadd.f32 %v1504_v61, %v1389_v12  ;;  %v1275_v63 = vpop.f32.mrf.mxu1 }
 0x28d   : > { %v1276_v8 = vadd.f32 %v1275_v63, %v1160_v59 }
 0x28e   : > { %1566 = vst.msk [vmem:[%s3104_s30 + $0x98] sm:$0xff] %vm1546_vm0, %v1505_v13 }
 0x290   : > { %v1391_v3 = vpop.f32.mrf.mxu2 }
 0x291   : > { %v1392_v29 = vadd.f32 %v1391_v3, %v1276_v8 }
 0x292   : > { %v1162_v32 = vpop.f32.mrf.mxu0 }
 0x293   : > { %v1163_v4 = vadd.f32 %v1162_v32, %v3021_v1  ;;  %v1507_v5 = vpop.f32.mrf.mxu3 }
 0x294   : > { %v1508_v49 = vadd.f32 %v1507_v5, %v1392_v29  ;;  %v1278_v6 = vpop.f32.mrf.mxu1 }
 0x295   : > { %v1279_v9 = vadd.f32 %v1278_v6, %v1163_v4 }
 0x296   : > { %1567 = vst.msk [vmem:[%s3104_s30 + $0xa0] sm:$0xff] %vm1546_vm0, %v1508_v49 }
 0x298   : > { %v1394_v33 = vpop.f32.mrf.mxu2 }
 0x299   : > { %v1395_v47 = vadd.f32 %v1394_v33, %v1279_v9 }
 0x29a   : > { %v1165_v16 = vpop.f32.mrf.mxu0 }
 0x29b   : > { %v1166_v28 = vadd.f32 %v1165_v16, %v3028_v19  ;;  %v1510_v17 = vpop.f32.mrf.mxu3 }
 0x29c   : > { %v1511_v18 = vadd.f32 %v1510_v17, %v1395_v47  ;;  %v1281_v21 = vpop.f32.mrf.mxu1 }
 0x29d   : > { %v1282_v22 = vadd.f32 %v1281_v21, %v1166_v28 }
 0x29e   : > { %1568 = vst.msk [vmem:[%s3104_s30 + $0xa8] sm:$0xff] %vm1546_vm0, %v1511_v18 }
 0x2a0   : > { %v1397_v23 = vpop.f32.mrf.mxu2 }
 0x2a1   : > { %v1398_v1 = vadd.f32 %v1397_v23, %v1282_v22 }
 0x2a2   : > { %v1168_v46 = vpop.f32.mrf.mxu0 }
 0x2a3   : > { %v1169_v24 = vadd.f32 %v1168_v46, %v3035_v37  ;;  %v1513_v25 = vpop.f32.mrf.mxu3 }
 0x2a4   : > { %v1514_v26 = vadd.f32 %v1513_v25, %v1398_v1  ;;  %v1284_v2 = vpop.f32.mrf.mxu1 }
 0x2a5   : > { %v1285_v48 = vadd.f32 %v1284_v2, %v1169_v24 }
 0x2a6   : > { %1569 = vst.msk [vmem:[%s3104_s30 + $0xb0] sm:$0xff] %vm1546_vm0, %v1514_v26 }
 0x2a8   : > { %v1400_v20 = vpop.f32.mrf.mxu2 }
 0x2a9   : > { %v1401_v19 = vadd.f32 %v1400_v20, %v1285_v48 }
 0x2aa   : > { %v1171_v44 = vpop.f32.mrf.mxu0 }
 0x2ab   : > { %v1172_v40 = vadd.f32 %v1171_v44, %v3042_v55  ;;  %v1516_v31 = vpop.f32.mrf.mxu3 }
 0x2ac   : > { %v1517_v35 = vadd.f32 %v1516_v31, %v1401_v19  ;;  %v1287_v38 = vpop.f32.mrf.mxu1 }
 0x2ad   : > { %v1288_v39 = vadd.f32 %v1287_v38, %v1172_v40 }
 0x2ae   : > { %1570 = vst.msk [vmem:[%s3104_s30 + $0xb8] sm:$0xff] %vm1546_vm0, %v1517_v35 }
 0x2b0   : > { %v1403_v41 = vpop.f32.mrf.mxu2 }
 0x2b1   : > { %v1404_v37 = vadd.f32 %v1403_v41, %v1288_v39 }
 0x2b2   : > { %v1174_v0 = vpop.f32.mrf.mxu0 }
 0x2b3   : > { %v1175_v42 = vadd.f32 %v1174_v0, %v3049_v10  ;;  %v1519_v43 = vpop.f32.mrf.mxu3 }
 0x2b4   : > { %v1520_v45 = vadd.f32 %v1519_v43, %v1404_v37  ;;  %v1290_v62 = vpop.f32.mrf.mxu1 }
 0x2b5   : > { %v1291_v50 = vadd.f32 %v1290_v62, %v1175_v42 }
 0x2b6   : > { %1571 = vst.msk [vmem:[%s3104_s30 + $0xc0] sm:$0xff] %vm1546_vm0, %v1520_v45 }
 0x2b8   : > { %v1406_v60 = vpop.f32.mrf.mxu2 }
 0x2b9   : > { %v1407_v55 = vadd.f32 %v1406_v60, %v1291_v50 }
 0x2ba   : > { %v1177_v15 = vpop.f32.mrf.mxu0 }
 0x2bb   : > { %v1178_v51 = vadd.f32 %v1177_v15, %v3056_v30  ;;  %v1522_v36 = vpop.f32.mrf.mxu3 }
 0x2bc   : > { %v1523_v56 = vadd.f32 %v1522_v36, %v1407_v55  ;;  %v1293_v54 = vpop.f32.mrf.mxu1 }
 0x2bd   : > { %v1294_v57 = vadd.f32 %v1293_v54, %v1178_v51 }
 0x2be   : > { %1572 = vst.msk [vmem:[%s3104_s30 + $0xc8] sm:$0xff] %vm1546_vm0, %v1523_v56 }
 0x2c0   : > { %v1409_v58 = vpop.f32.mrf.mxu2 }
 0x2c1   : > { %v1410_v10 = vadd.f32 %v1409_v58, %v1294_v57 }
 0x2c2   : > { %v1180_v12 = vpop.f32.mrf.mxu0 }
 0x2c3   : > { %v1181_v14 = vadd.f32 %v1180_v12, %v3063_v52  ;;  %v1525_v59 = vpop.f32.mrf.mxu3 }
 0x2c4   : > { %v1526_v61 = vadd.f32 %v1525_v59, %v1410_v10  ;;  %v1296_v13 = vpop.f32.mrf.mxu1 }
 0x2c5   : > { %v1297_v63 = vadd.f32 %v1296_v13, %v1181_v14 }
 0x2c6   : > { %1573 = vst.msk [vmem:[%s3104_s30 + $0xd0] sm:$0xff] %vm1546_vm0, %v1526_v61 }
 0x2c8   : > { %v1412_v8 = vpop.f32.mrf.mxu2 }
 0x2c9   : > { %v1413_v30 = vadd.f32 %v1412_v8, %v1297_v63 }
 0x2ca   : > { %v1183_v3 = vpop.f32.mrf.mxu0 }
 0x2cb   : > { %v1184_v29 = vadd.f32 %v1183_v3, %v3069_v7  ;;  %v1528_v32 = vpop.f32.mrf.mxu3 }
 0x2cc   : > { %v1529_v4 = vadd.f32 %v1528_v32, %v1413_v30  ;;  %v1299_v5 = vpop.f32.mrf.mxu1 }
 0x2cd   : > { %v1300_v49 = vadd.f32 %v1299_v5, %v1184_v29 }
 0x2ce   : > { %1574 = vst.msk [vmem:[%s3104_s30 + $0xd8] sm:$0xff] %vm1546_vm0, %v1529_v4 }
 0x2d0   : > { %v1415_v6 = vpop.f32.mrf.mxu2 }
 0x2d1   : > { %v1416_v52 = vadd.f32 %v1415_v6, %v1300_v49 }
 0x2d2   : > { %v1186_v9 = vpop.f32.mrf.mxu0 }
 0x2d3   : > { %v1187_v33 = vadd.f32 %v1186_v9, %v3075_v27  ;;  %v1531_v47 = vpop.f32.mrf.mxu3 }
 0x2d4   : > { %v1532_v16 = vadd.f32 %v1531_v47, %v1416_v52  ;;  %v1302_v28 = vpop.f32.mrf.mxu1 }
 0x2d5   : > { %v1303_v17 = vadd.f32 %v1302_v28, %v1187_v33 }
 0x2d6   : > { %1575 = vst.msk [vmem:[%s3104_s30 + $0xe0] sm:$0xff] %vm1546_vm0, %v1532_v16 }
 0x2d8   : > { %v1418_v18 = vpop.f32.mrf.mxu2 }
 0x2d9   : > { %v1419_v7 = vadd.f32 %v1418_v18, %v1303_v17 }
 0x2da   : > { %v1189_v21 = vpop.f32.mrf.mxu0 }
 0x2db   : > { %v1190_v22 = vadd.f32 %v1189_v21, %v3081_v53  ;;  %v1534_v23 = vpop.f32.mrf.mxu3 }
 0x2dc   : > { %v1535_v1 = vadd.f32 %v1534_v23, %v1419_v7  ;;  %v1305_v46 = vpop.f32.mrf.mxu1 }
 0x2dd   : > { %v1306_v24 = vadd.f32 %v1305_v46, %v1190_v22 }
 0x2de   : > { %1576 = vst.msk [vmem:[%s3104_s30 + $0xe8] sm:$0xff] %vm1546_vm0, %v1535_v1 }
 0x2e0   : > { %v1421_v25 = vpop.f32.mrf.mxu2 }
 0x2e1   : > { %v1422_v27 = vadd.f32 %v1421_v25, %v1306_v24 }
 0x2e2   : > { %v1192_v26 = vpop.f32.mrf.mxu0 }
 0x2e3   : > { %v1193_v2 = vadd.f32 %v1192_v26, %v3087_v11  ;;  %v1537_v48 = vpop.f32.mrf.mxu3 }
 0x2e4   : > { %v1538_v20 = vadd.f32 %v1537_v48, %v1422_v27  ;;  %v1308_v19 = vpop.f32.mrf.mxu1 }
 0x2e5   : > { %v1309_v44 = vadd.f32 %v1308_v19, %v1193_v2 }
 0x2e6   : > { %1577 = vst.msk [vmem:[%s3104_s30 + $0xf0] sm:$0xff] %vm1546_vm0, %v1538_v20 }
 0x2e8   : > { %v1424_v53 = vpop.f32.mrf.mxu2 }
 0x2e9   : > { %v1425_v40 = vadd.f32 %v1424_v53, %v1309_v44 }
 0x2ea   : > { %v1195_v31 = vpop.f32.mrf.mxu0 }
 0x2eb   : > { %v1196_v35 = vadd.f32 %v1195_v31, %v3094_v34  ;;  %v1540_v38 = vpop.f32.mrf.mxu3 }
 0x2ec   : > { %v1541_v39 = vadd.f32 %v1540_v38, %v1425_v40  ;;  %v1311_v41 = vpop.f32.mrf.mxu1 }
 0x2ed   : > { %v1312_v37 = vadd.f32 %v1311_v41, %v1196_v35 }
 0x2ee   : > { %1578 = vst.msk [vmem:[%s3104_s30 + $0xf8] sm:$0xff] %vm1546_vm0, %v1541_v39 }
 0x2f0   : > { %v1427_v0 = vpop.f32.mrf.mxu2 }
 0x2f1   : > { %v1428_v11 = vadd.f32 %v1427_v0, %v1312_v37 }
 0x2f2   : > { %1586 = sbr.rel (!%p2336_p10) target bundleno = 823 (0x337), region = 44 }
 0x2f3   : > { %v1543_v42 = vpop.f32.mrf.mxu3 }
 0x2f4   : > { %v1544_v43 = vadd.f32 %v1543_v42, %v1428_v11 }
 0x2f6   : > { %1579 = vst.msk [vmem:[%s3104_s30 + $0x100] sm:$0xff] %vm1546_vm0, %v1544_v43 }
 0x2f7   : > { %s3432_s11 = smov (!%p1589_p8, %s1588_s11), 33 }
 0x2f8   : > { %s1954_s27 = sshll.u32 %s3432_s11, 3 }
 0x2f9   : > { %p1957_p2 = scmp.eq.s32.totalorder %s1954_s27, 0 }
 0x2fa   : > { %s3276_s23 = sshrl.u32 (!%p1957_p2), %s3432_s11, 5 }
 0x2fb   : > { %1597 = sbr.rel (%p1957_p2) target bundleno = 823 (0x337), region = 48  ;;  %p1958_p10 = scmp.le.s32.totalorder (!%p1957_p2), %s3276_s23, 0 }
 0x300   : > { %1885 = sbr.rel (%p1958_p10) target bundleno = 806 (0x326), region = 130  ;;  %s3420_s16 = smov (!%p1958_p10), %s3270_s26 }
 0x301   : > { %s3421_s29 = smov (!%p1958_p10), %s3104_s30  ;;  %s3285_s4 = smov (!%p1958_p10), 0  }
 0x302   : > { %s3287_s15 = smov (!%p1958_p10), 0  }
 0x305 LB: >> { %v1722_v34 = vld [vmem:[%s2238_s29] sm:$0xff]  ;;  %v1724_v45 = vld [vmem:[%s2238_s29 + $0x8] sm:$0xff]  ;;  %v1726_v62 = vld [vmem:[%s2238_s29 + $0x10] sm:$0xff]  ;;  %s1786_s24 = sadd.s32 1, %s2242_s4  ;;  %s1716_s15 = sadd.s32 1, %s2246_s15   ;;  %s2246_s15 = sphi %s3287_s15, %s1716_s15   ;;  %s2242_s4 = sphi %s3285_s4, %s3424_s4   ;;  %s2238_s29 = sphi %s3421_s29, %s3423_s29   ;;  %s2234_s16 = sphi %s3420_s16, %s3422_s16  }
 0x306   : >> { %1723 = vst [vmem:[%s2234_s16] sm:$0xff] %v1722_v34  ;;  %v1728_v50 = vld [vmem:[%s2238_s29 + $0x18] sm:$0xff]  ;;  %p1787_p6 = scmp.ge.s32.totalorder %s1786_s24, %s3276_s23  ;;  %v1730_v60 = vld [vmem:[%s2238_s29 + $0x20] sm:$0xff]  ;;  %v1732_v55 = vld [vmem:[%s2238_s29 + $0x28] sm:$0xff]  ;;  %p1715_p7 = scmp.ge.s32.totalorder %s1716_s15, %s3276_s23 }
 0x307   : >> { %1725 = vst [vmem:[%s2234_s16 + $0x8] sm:$0xff] %v1724_v45  ;;  %v1734_v15 = vld [vmem:[%s2238_s29 + $0x30] sm:$0xff]  ;;  %v1736_v51 = vld [vmem:[%s2238_s29 + $0x38] sm:$0xff]  ;;  %v1738_v36 = vld [vmem:[%s2238_s29 + $0x40] sm:$0xff] }
 0x308   : >> { %1727 = vst [vmem:[%s2234_s16 + $0x10] sm:$0xff] %v1726_v62  ;;  %s3434_s24 = smov (%p1787_p6, %s1786_s24), 0  ;;  %v1740_v56 = vld [vmem:[%s2238_s29 + $0x48] sm:$0xff]  ;;  %v1742_v54 = vld [vmem:[%s2238_s29 + $0x50] sm:$0xff]  ;;  %v1744_v57 = vld [vmem:[%s2238_s29 + $0x58] sm:$0xff] }
 0x309   : >> { %1729 = vst [vmem:[%s2234_s16 + $0x18] sm:$0xff] %v1728_v50  ;;  %s1959_s6 = sshll.u32 %s3434_s24, 8  ;;  %v1746_v58 = vld [vmem:[%s2238_s29 + $0x60] sm:$0xff]  ;;  %v1748_v10 = vld [vmem:[%s2238_s29 + $0x68] sm:$0xff]  ;;  %v1750_v12 = vld [vmem:[%s2238_s29 + $0x70] sm:$0xff]  ;;  %s3424_s4 = smov %s3434_s24 }
 0x30a   : >> { %1731 = vst [vmem:[%s2234_s16 + $0x20] sm:$0xff] %v1730_v60  ;;  %s3319_s10 = scalar_lea.vmem %s3104_s30, %s1959_s6 [#allocation6]   ;;  %s3322_s12 = scalar_lea.vmem %s3270_s26, %s1959_s6   ;;  %v1752_v14 = vld [vmem:[%s2238_s29 + $0x78] sm:$0xff]  ;;  %v1754_v59 = vld [vmem:[%s2238_s29 + $0x80] sm:$0xff]  ;;  %v1756_v61 = vld [vmem:[%s2238_s29 + $0x88] sm:$0xff] }
 0x30b   : >> { %1733 = vst [vmem:[%s2234_s16 + $0x28] sm:$0xff] %v1732_v55  ;;  %v1758_v13 = vld [vmem:[%s2238_s29 + $0x90] sm:$0xff]  ;;  %v1760_v63 = vld [vmem:[%s2238_s29 + $0x98] sm:$0xff]  ;;  %v1762_v8 = vld [vmem:[%s2238_s29 + $0xa0] sm:$0xff] }
 0x30c   : >> { %1735 = vst [vmem:[%s2234_s16 + $0x30] sm:$0xff] %v1734_v15  ;;  %v1764_v30 = vld [vmem:[%s2238_s29 + $0xa8] sm:$0xff]  ;;  %v1766_v3 = vld [vmem:[%s2238_s29 + $0xb0] sm:$0xff]  ;;  %v1768_v29 = vld [vmem:[%s2238_s29 + $0xb8] sm:$0xff] }
 0x30d   : >> { %1737 = vst [vmem:[%s2234_s16 + $0x38] sm:$0xff] %v1736_v51  ;;  %v1770_v32 = vld [vmem:[%s2238_s29 + $0xc0] sm:$0xff]  ;;  %v1772_v4 = vld [vmem:[%s2238_s29 + $0xc8] sm:$0xff]  ;;  %v1774_v5 = vld [vmem:[%s2238_s29 + $0xd0] sm:$0xff] }
 0x30e   : >> { %1739 = vst [vmem:[%s2234_s16 + $0x40] sm:$0xff] %v1738_v36  ;;  %v1776_v49 = vld [vmem:[%s2238_s29 + $0xd8] sm:$0xff]  ;;  %v1778_v6 = vld [vmem:[%s2238_s29 + $0xe0] sm:$0xff]  ;;  %v1780_v52 = vld [vmem:[%s2238_s29 + $0xe8] sm:$0xff] }
 0x30f   : >> { %1741 = vst [vmem:[%s2234_s16 + $0x48] sm:$0xff] %v1740_v56  ;;  %v1782_v9 = vld [vmem:[%s2238_s29 + $0xf0] sm:$0xff]  ;;  %v1784_v33 = vld [vmem:[%s2238_s29 + $0xf8] sm:$0xff]  ;;  %s3423_s29 = smov %s3319_s10 }
 0x310   : >> { %1743 = vst [vmem:[%s2234_s16 + $0x50] sm:$0xff] %v1742_v54 }
 0x311   : >> { %1745 = vst [vmem:[%s2234_s16 + $0x58] sm:$0xff] %v1744_v57 }
 0x312   : >> { %1747 = vst [vmem:[%s2234_s16 + $0x60] sm:$0xff] %v1746_v58 }
 0x313   : >> { %1749 = vst [vmem:[%s2234_s16 + $0x68] sm:$0xff] %v1748_v10 }
 0x314   : >> { %1751 = vst [vmem:[%s2234_s16 + $0x70] sm:$0xff] %v1750_v12 }
 0x315   : >> { %1753 = vst [vmem:[%s2234_s16 + $0x78] sm:$0xff] %v1752_v14 }
 0x316   : >> { %1755 = vst [vmem:[%s2234_s16 + $0x80] sm:$0xff] %v1754_v59 }
 0x317   : >> { %1757 = vst [vmem:[%s2234_s16 + $0x88] sm:$0xff] %v1756_v61 }
 0x318   : >> { %1759 = vst [vmem:[%s2234_s16 + $0x90] sm:$0xff] %v1758_v13 }
 0x319   : >> { %1761 = vst [vmem:[%s2234_s16 + $0x98] sm:$0xff] %v1760_v63 }
 0x31a   : >> { %1763 = vst [vmem:[%s2234_s16 + $0xa0] sm:$0xff] %v1762_v8 }
 0x31b   : >> { %1765 = vst [vmem:[%s2234_s16 + $0xa8] sm:$0xff] %v1764_v30 }
 0x31c   : >> { %1767 = vst [vmem:[%s2234_s16 + $0xb0] sm:$0xff] %v1766_v3 }
 0x31d   : >> { %1769 = vst [vmem:[%s2234_s16 + $0xb8] sm:$0xff] %v1768_v29 }
 0x31e   : >> { %1771 = vst [vmem:[%s2234_s16 + $0xc0] sm:$0xff] %v1770_v32 }
 0x31f   : >> { %1773 = vst [vmem:[%s2234_s16 + $0xc8] sm:$0xff] %v1772_v4 }
 0x320   : >> { %1775 = vst [vmem:[%s2234_s16 + $0xd0] sm:$0xff] %v1774_v5 }
 0x321   : >> { %1777 = vst [vmem:[%s2234_s16 + $0xd8] sm:$0xff] %v1776_v49  ;;  %1718 = sbr.rel (!%p1715_p7) target bundleno = 773 (0x305), region = 136 }
 0x322   : >> { %1779 = vst [vmem:[%s2234_s16 + $0xe0] sm:$0xff] %v1778_v6 }
 0x323   : >> { %1781 = vst [vmem:[%s2234_s16 + $0xe8] sm:$0xff] %v1780_v52 }
 0x324   : >> { %1783 = vst [vmem:[%s2234_s16 + $0xf0] sm:$0xff] %v1782_v9 }
 0x325   : >> { %1785 = vst [vmem:[%s2234_s16 + $0xf8] sm:$0xff] %v1784_v33  ;;  %s3422_s16 = smov %s3322_s12 }
 0x326 PF: > { %s3387_s19 = sand.u32 31, %s3432_s11   ;;  %s1973_s21 = sshll.u32 %s3276_s23, 8 }
 0x327   : > { %s1797_s22 = scalar_lea.vmem %s3104_s30, %s1973_s21 [#allocation6]   ;;  %s1799_s28 = scalar_lea.vmem %s3270_s26, %s1973_s21  }
 0x328   : > { %p1964_p9 = scmp.le.s32.totalorder %s3387_s19, 0 }
 0x329   : > { %s2248_s7 = smov (!%p1964_p9), %s1799_s28   ;;  %s2252_s8 = smov (!%p1964_p9), %s1797_s22  }
 0x32a   : > { %1899 = sbr.rel (%p1964_p9) target bundleno = 823 (0x337), region = 141  ;;  %s2256_s5 = smov (!%p1964_p9), 0  }
 0x32b   : > { %s2260_s9 = smov (!%p1964_p9), 0  }
 0x32f LB: >> { %v1809_v47 = vld [vmem:[%s2254_s8] sm:$0xff]  ;;  %s1811_s11 = sadd.s32 1, %s2258_s5  ;;  %s1803_s9 = sadd.s32 1, %s2262_s9   ;;  %s2262_s9 = sphi %s2260_s9, %s1803_s9   ;;  %s2258_s5 = sphi %s2256_s5, %s2257_s5   ;;  %s2254_s8 = sphi %s2252_s8, %s1816_s8   ;;  %s2250_s7 = sphi %s2248_s7, %s1817_s7  }
 0x330   : >> { %1810 = vst [vmem:[%s2250_s7] sm:$0xff] %v1809_v47  ;;  %p1812_p12 = scmp.ge.s32.totalorder %s1811_s11, %s3387_s19  ;;  %p1802_p13 = scmp.ge.s32.totalorder %s1803_s9, %s3387_s19 }
 0x332   : >> { %s3436_s11 = smov (%p1812_p12, %s1811_s11), 0  ;;  %1805 = sbr.rel (!%p1802_p13) target bundleno = 815 (0x32f), region = 147 }
 0x333   : >> { %s1965_s30 = sshll.u32 %s3436_s11, 3  ;;  %s2257_s5 = smov %s3436_s11  }
 0x334   : >> { %s1816_s8 = scalar_lea.vmem %s1797_s22, %s1965_s30 [#allocation6]   ;;  %s1817_s7 = scalar_lea.vmem %s1799_s28, %s1965_s30  }
 0x337 PF: > { %p14_p0 = scmp.ge.s32.totalorder %s2310_s17, 4   ;;  %s3425_s12 = smov %s2222_s13 }
 0x338   : > { %s3426_s13 = smov %s2226_s14  ;;  %s3427_s14 = smov %s2320_s20 }
 0x339   : > { %s3428_s15 = smov %s2310_s17  ;;  %16 = sbr.rel (!%p14_p0) target bundleno = 4 (0x4), region = 158 }
 0x33e   :  { %1833 = vsyncpa [#allocation3], 1 }
 0x33f   :  { %1835 = vsyncpa [#allocation3 + $0x1], 1 }
 0x340   :  { %1836 = vsyncpa [#allocation5], 1 }

</bundles_post_ra>
